<compile_context>
chip_gen: v7x
topology: tpu7x:2x2x1
jax: 0.10.0
libtpu: 0.0.40
codegen_flags: <defaults>
</compile_context>

<pallas_src>
import jax
import jax.numpy as jnp
from jax.experimental import pallas as pl
from jax.experimental.pallas import tpu as pltpu

# ---- small BERT-like config ----
VOCAB = 64
B = 2          # batch
S = 8          # sequence length
H = 32         # hidden size
NUM_HEADS = 2
DH = H // NUM_HEADS
FFN = 64       # intermediate size
LAYERS = 2
EPS = 1e-12    # BERT layernorm eps
T = B * S      # flattened token count


# ---------------- in-kernel helpers ----------------
def _layernorm(x, gamma, beta):
    mu = jnp.mean(x, axis=-1, keepdims=True)
    d = x - mu
    var = jnp.mean(d * d, axis=-1, keepdims=True)
    return d * jax.lax.rsqrt(var + EPS) * gamma + beta


def _gelu(x):
    # TODO(synk): BERT uses exact erf GELU; erf is not reliably lowered, tanh approximation used.
    c = 0.7978845608028654  # sqrt(2/pi)
    return 0.5 * x * (1.0 + jnp.tanh(c * (x + 0.044715 * x * x * x)))


# ---------------- single fused Pallas kernel ----------------
def encoder_kernel(*refs):
    ids_ref, tok_ref, pos_ref, typ_ref, eg_ref, eb_ref = refs[:6]
    layer_refs = refs[6:-1]
    o_ref = refs[-1]

    # ---- embedding gather (token ids in SMEM, table in VMEM), fully in-kernel ----
    rows = []
    for b in range(B):
        for s in range(S):
            idx = ids_ref[b, s]                                  # scalar from SMEM
            rows.append(tok_ref[pl.ds(idx, 1), :])               # (1, H) dynamic row slice
    e = jnp.concatenate(rows, axis=0)                            # (T, H)
    e = e + jnp.concatenate([pos_ref[...]] * B, axis=0)          # position embeddings
    e = e + typ_ref[...]                                         # token_type 0 embeddings
    x = _layernorm(e, eg_ref[...], eb_ref[...])                  # (T, H)

    # ---- transformer layers (static unroll over LAYERS) ----
    for l in range(LAYERS):
        (wqkv, bqkv, wo, bo, g1, be1,
         w1, b1, w2, b2, g2, be2) = layer_refs[12 * l:12 * (l + 1)]

        # fused QKV projection: one (T, H) x (H, 3H) matmul (scale folded into Wq at init)
        qkv = jnp.dot(x, wqkv[...], preferred_element_type=jnp.float32) + bqkv[...]   # (T, 3H)
        q = qkv[:, 0 * H:1 * H].reshape(B, S, H)
        k = qkv[:, 1 * H:2 * H].reshape(B, S, H)
        v = qkv[:, 2 * H:3 * H].reshape(B, S, H)

        # attention: batched over B via 3-D einsum; tiny static loop over heads
        ctx_heads = []
        for h in range(NUM_HEADS):
            sl = slice(h * DH, (h + 1) * DH)
            qs, ks, vs = q[:, :, sl], k[:, :, sl], v[:, :, sl]                         # (B, S, DH)
            sc = jnp.einsum('bqd,bkd->bqk', qs, ks,
                            preferred_element_type=jnp.float32)                       # (B, S, S)
            sc = sc - jnp.max(sc, axis=-1, keepdims=True)
            p = jnp.exp(sc)
            p = p * pl.reciprocal(jnp.sum(p, axis=-1, keepdims=True), approx=True)
            ctx_heads.append(jnp.einsum('bqk,bkd->bqd', p, vs,
                                        preferred_element_type=jnp.float32))          # (B, S, DH)
        ctx = jnp.concatenate(ctx_heads, axis=-1).reshape(T, H)

        attn = jnp.dot(ctx, wo[...], preferred_element_type=jnp.float32) + bo[...]
        h1 = _layernorm(x + attn, g1[...], be1[...])

        f = _gelu(jnp.dot(h1, w1[...], preferred_element_type=jnp.float32) + b1[...])
        f = jnp.dot(f, w2[...], preferred_element_type=jnp.float32) + b2[...]
        x = _layernorm(h1 + f, g2[...], be2[...])

    # ---- mean pool over the sequence dim (torch.mean(all_hidden, 1)) ----
    o_ref[...] = jnp.mean(x.reshape(B, S, H), axis=1)


# ---------------- pallas_call wrapper ----------------
def encoder_forward(token_ids, params):
    tok_emb, pos_emb, type_row, emb_g, emb_b, layers = params
    flat = [tok_emb, pos_emb, type_row, emb_g, emb_b]
    for lp in layers:
        flat.extend(lp)

    in_specs = ([pl.BlockSpec(memory_space=pltpu.MemorySpace.SMEM)]      # token ids -> SMEM
                + [pl.BlockSpec(memory_space=pltpu.MemorySpace.VMEM)] * len(flat))

    return pl.pallas_call(
        encoder_kernel,
        out_shape=jax.ShapeDtypeStruct((B, H), jnp.float32),
        in_specs=in_specs,
        out_specs=pl.BlockSpec(memory_space=pltpu.MemorySpace.VMEM),
    )(token_ids, *flat)


# ---------------- parameters (deterministic synthetic init) ----------------
def init_params(key):
    def nrm(k, shape):
        return (0.02 * jax.random.normal(k, shape)).astype(jnp.float32)

    keys = iter(jax.random.split(key, 3 + LAYERS * 6))
    tok_emb = nrm(next(keys), (VOCAB, H))
    pos_emb = nrm(next(keys), (S, H))
    type_row = nrm(next(keys), (1, H))            # token_type 0 row only
    emb_g = jnp.ones((1, H), jnp.float32)
    emb_b = jnp.zeros((1, H), jnp.float32)

    scale = 1.0 / (DH ** 0.5)
    layers = []
    for _ in range(LAYERS):
        wq = nrm(next(keys), (H, H)) * scale      # 1/sqrt(DH) folded into Wq
        wk = nrm(next(keys), (H, H))
        wv = nrm(next(keys), (H, H))
        wqkv = jnp.concatenate([wq, wk, wv], axis=1)          # (H, 3H)
        bqkv = jnp.zeros((1, 3 * H), jnp.float32)
        wo = nrm(next(keys), (H, H)); bo = jnp.zeros((1, H), jnp.float32)
        g1 = jnp.ones((1, H), jnp.float32); be1 = jnp.zeros((1, H), jnp.float32)
        w1 = nrm(next(keys), (H, FFN)); b1 = jnp.zeros((1, FFN), jnp.float32)
        w2 = nrm(next(keys), (FFN, H)); b2 = jnp.zeros((1, H), jnp.float32)
        g2 = jnp.ones((1, H), jnp.float32); be2 = jnp.zeros((1, H), jnp.float32)
        layers.append((wqkv, bqkv, wo, bo, g1, be1, w1, b1, w2, b2, g2, be2))
    return (tok_emb, pos_emb, type_row, emb_g, emb_b, layers)


if __name__ == "__main__":
    root = jax.random.PRNGKey(0)
    pkey, xkey = jax.random.split(root)
    params = init_params(pkey)
    x = jax.random.randint(xkey, (B, S), 0, VOCAB, dtype=jnp.int32)

    out = encoder_forward(x, params)
    out = jax.block_until_ready(out)
    assert out.shape == (B, H) and out.dtype == jnp.float32
    assert bool(jnp.all(jnp.isfinite(out)))
    print("KERNEL_OK")
</pallas_src>

<mosaic_0001>
module attributes {stable_mosaic.version = 11 : i64} {
  func.func @encoder_kernel(%arg0: memref<2x8xi32, #tpu.memory_space<smem>>, %arg1: memref<64x32xf32, #tpu.memory_space<vmem>>, %arg2: memref<8x32xf32, #tpu.memory_space<vmem>>, %arg3: memref<1x32xf32, #tpu.memory_space<vmem>>, %arg4: memref<1x32xf32, #tpu.memory_space<vmem>>, %arg5: memref<1x32xf32, #tpu.memory_space<vmem>>, %arg6: memref<32x96xf32, #tpu.memory_space<vmem>>, %arg7: memref<1x96xf32, #tpu.memory_space<vmem>>, %arg8: memref<32x32xf32, #tpu.memory_space<vmem>>, %arg9: memref<1x32xf32, #tpu.memory_space<vmem>>, %arg10: memref<1x32xf32, #tpu.memory_space<vmem>>, %arg11: memref<1x32xf32, #tpu.memory_space<vmem>>, %arg12: memref<32x64xf32, #tpu.memory_space<vmem>>, %arg13: memref<1x64xf32, #tpu.memory_space<vmem>>, %arg14: memref<64x32xf32, #tpu.memory_space<vmem>>, %arg15: memref<1x32xf32, #tpu.memory_space<vmem>>, %arg16: memref<1x32xf32, #tpu.memory_space<vmem>>, %arg17: memref<1x32xf32, #tpu.memory_space<vmem>>, %arg18: memref<32x96xf32, #tpu.memory_space<vmem>>, %arg19: memref<1x96xf32, #tpu.memory_space<vmem>>, %arg20: memref<32x32xf32, #tpu.memory_space<vmem>>, %arg21: memref<1x32xf32, #tpu.memory_space<vmem>>, %arg22: memref<1x32xf32, #tpu.memory_space<vmem>>, %arg23: memref<1x32xf32, #tpu.memory_space<vmem>>, %arg24: memref<32x64xf32, #tpu.memory_space<vmem>>, %arg25: memref<1x64xf32, #tpu.memory_space<vmem>>, %arg26: memref<64x32xf32, #tpu.memory_space<vmem>>, %arg27: memref<1x32xf32, #tpu.memory_space<vmem>>, %arg28: memref<1x32xf32, #tpu.memory_space<vmem>>, %arg29: memref<1x32xf32, #tpu.memory_space<vmem>>, %arg30: memref<2x32xf32, #tpu.memory_space<vmem>>) attributes {dimension_semantics = [], scalar_prefetch = 0 : i64, scratch_operands = 0 : i64, tpu.core_type = #tpu.core_type<tc>} {
    %c0 = arith.constant 0 : index
    %c0_0 = arith.constant 0 : index
    %0 = memref.load %arg0[%c0, %c0_0] : memref<2x8xi32, #tpu.memory_space<smem>>
    %1 = arith.index_cast %0 : i32 to index
    %c0_1 = arith.constant 0 : index
    %2 = vector.load %arg1[%1, %c0_1] : memref<64x32xf32, #tpu.memory_space<vmem>>, vector<1x32xf32>
    %c0_2 = arith.constant 0 : index
    %c1 = arith.constant 1 : index
    %3 = memref.load %arg0[%c0_2, %c1] : memref<2x8xi32, #tpu.memory_space<smem>>
    %4 = arith.index_cast %3 : i32 to index
    %c0_3 = arith.constant 0 : index
    %5 = vector.load %arg1[%4, %c0_3] : memref<64x32xf32, #tpu.memory_space<vmem>>, vector<1x32xf32>
    %c0_4 = arith.constant 0 : index
    %c2 = arith.constant 2 : index
    %6 = memref.load %arg0[%c0_4, %c2] : memref<2x8xi32, #tpu.memory_space<smem>>
    %7 = arith.index_cast %6 : i32 to index
    %c0_5 = arith.constant 0 : index
    %8 = vector.load %arg1[%7, %c0_5] : memref<64x32xf32, #tpu.memory_space<vmem>>, vector<1x32xf32>
    %c0_6 = arith.constant 0 : index
    %c3 = arith.constant 3 : index
    %9 = memref.load %arg0[%c0_6, %c3] : memref<2x8xi32, #tpu.memory_space<smem>>
    %10 = arith.index_cast %9 : i32 to index
    %c0_7 = arith.constant 0 : index
    %11 = vector.load %arg1[%10, %c0_7] : memref<64x32xf32, #tpu.memory_space<vmem>>, vector<1x32xf32>
    %c0_8 = arith.constant 0 : index
    %c4 = arith.constant 4 : index
    %12 = memref.load %arg0[%c0_8, %c4] : memref<2x8xi32, #tpu.memory_space<smem>>
    %13 = arith.index_cast %12 : i32 to index
    %c0_9 = arith.constant 0 : index
    %14 = vector.load %arg1[%13, %c0_9] : memref<64x32xf32, #tpu.memory_space<vmem>>, vector<1x32xf32>
    %c0_10 = arith.constant 0 : index
    %c5 = arith.constant 5 : index
    %15 = memref.load %arg0[%c0_10, %c5] : memref<2x8xi32, #tpu.memory_space<smem>>
    %16 = arith.index_cast %15 : i32 to index
    %c0_11 = arith.constant 0 : index
    %17 = vector.load %arg1[%16, %c0_11] : memref<64x32xf32, #tpu.memory_space<vmem>>, vector<1x32xf32>
    %c0_12 = arith.constant 0 : index
    %c6 = arith.constant 6 : index
    %18 = memref.load %arg0[%c0_12, %c6] : memref<2x8xi32, #tpu.memory_space<smem>>
    %19 = arith.index_cast %18 : i32 to index
    %c0_13 = arith.constant 0 : index
    %20 = vector.load %arg1[%19, %c0_13] : memref<64x32xf32, #tpu.memory_space<vmem>>, vector<1x32xf32>
    %c0_14 = arith.constant 0 : index
    %c7 = arith.constant 7 : index
    %21 = memref.load %arg0[%c0_14, %c7] : memref<2x8xi32, #tpu.memory_space<smem>>
    %22 = arith.index_cast %21 : i32 to index
    %c0_15 = arith.constant 0 : index
    %23 = vector.load %arg1[%22, %c0_15] : memref<64x32xf32, #tpu.memory_space<vmem>>, vector<1x32xf32>
    %c1_16 = arith.constant 1 : index
    %c0_17 = arith.constant 0 : index
    %24 = memref.load %arg0[%c1_16, %c0_17] : memref<2x8xi32, #tpu.memory_space<smem>>
    %25 = arith.index_cast %24 : i32 to index
    %c0_18 = arith.constant 0 : index
    %26 = vector.load %arg1[%25, %c0_18] : memref<64x32xf32, #tpu.memory_space<vmem>>, vector<1x32xf32>
    %c1_19 = arith.constant 1 : index
    %c1_20 = arith.constant 1 : index
    %27 = memref.load %arg0[%c1_19, %c1_20] : memref<2x8xi32, #tpu.memory_space<smem>>
    %28 = arith.index_cast %27 : i32 to index
    %c0_21 = arith.constant 0 : index
    %29 = vector.load %arg1[%28, %c0_21] : memref<64x32xf32, #tpu.memory_space<vmem>>, vector<1x32xf32>
    %c1_22 = arith.constant 1 : index
    %c2_23 = arith.constant 2 : index
    %30 = memref.load %arg0[%c1_22, %c2_23] : memref<2x8xi32, #tpu.memory_space<smem>>
    %31 = arith.index_cast %30 : i32 to index
    %c0_24 = arith.constant 0 : index
    %32 = vector.load %arg1[%31, %c0_24] : memref<64x32xf32, #tpu.memory_space<vmem>>, vector<1x32xf32>
    %c1_25 = arith.constant 1 : index
    %c3_26 = arith.constant 3 : index
    %33 = memref.load %arg0[%c1_25, %c3_26] : memref<2x8xi32, #tpu.memory_space<smem>>
    %34 = arith.index_cast %33 : i32 to index
    %c0_27 = arith.constant 0 : index
    %35 = vector.load %arg1[%34, %c0_27] : memref<64x32xf32, #tpu.memory_space<vmem>>, vector<1x32xf32>
    %c1_28 = arith.constant 1 : index
    %c4_29 = arith.constant 4 : index
    %36 = memref.load %arg0[%c1_28, %c4_29] : memref<2x8xi32, #tpu.memory_space<smem>>
    %37 = arith.index_cast %36 : i32 to index
    %c0_30 = arith.constant 0 : index
    %38 = vector.load %arg1[%37, %c0_30] : memref<64x32xf32, #tpu.memory_space<vmem>>, vector<1x32xf32>
    %c1_31 = arith.constant 1 : index
    %c5_32 = arith.constant 5 : index
    %39 = memref.load %arg0[%c1_31, %c5_32] : memref<2x8xi32, #tpu.memory_space<smem>>
    %40 = arith.index_cast %39 : i32 to index
    %c0_33 = arith.constant 0 : index
    %41 = vector.load %arg1[%40, %c0_33] : memref<64x32xf32, #tpu.memory_space<vmem>>, vector<1x32xf32>
    %c1_34 = arith.constant 1 : index
    %c6_35 = arith.constant 6 : index
    %42 = memref.load %arg0[%c1_34, %c6_35] : memref<2x8xi32, #tpu.memory_space<smem>>
    %43 = arith.index_cast %42 : i32 to index
    %c0_36 = arith.constant 0 : index
    %44 = vector.load %arg1[%43, %c0_36] : memref<64x32xf32, #tpu.memory_space<vmem>>, vector<1x32xf32>
    %c1_37 = arith.constant 1 : index
    %c7_38 = arith.constant 7 : index
    %45 = memref.load %arg0[%c1_37, %c7_38] : memref<2x8xi32, #tpu.memory_space<smem>>
    %46 = arith.index_cast %45 : i32 to index
    %c0_39 = arith.constant 0 : index
    %47 = vector.load %arg1[%46, %c0_39] : memref<64x32xf32, #tpu.memory_space<vmem>>, vector<1x32xf32>
    %48 = tpu.concatenate %2, %5, %8, %11, %14, %17, %20, %23, %26, %29, %32, %35, %38, %41, %44, %47 in 0 : vector<1x32xf32>, vector<1x32xf32>, vector<1x32xf32>, vector<1x32xf32>, vector<1x32xf32>, vector<1x32xf32>, vector<1x32xf32>, vector<1x32xf32>, vector<1x32xf32>, vector<1x32xf32>, vector<1x32xf32>, vector<1x32xf32>, vector<1x32xf32>, vector<1x32xf32>, vector<1x32xf32>, vector<1x32xf32> -> vector<16x32xf32>
    %c0_40 = arith.constant 0 : index
    %c0_41 = arith.constant 0 : index
    %49 = vector.load %arg2[%c0_40, %c0_41] : memref<8x32xf32, #tpu.memory_space<vmem>>, vector<8x32xf32>
    %50 = tpu.concatenate %49, %49 in 0 : vector<8x32xf32>, vector<8x32xf32> -> vector<16x32xf32>
    %51 = arith.addf %48, %50 : vector<16x32xf32>
    %c0_42 = arith.constant 0 : index
    %c0_43 = arith.constant 0 : index
    %52 = vector.load %arg3[%c0_42, %c0_43] : memref<1x32xf32, #tpu.memory_space<vmem>>, vector<1x32xf32>
    %53 = vector.broadcast %52 : vector<1x32xf32> to vector<16x32xf32>
    %54 = arith.addf %51, %53 : vector<16x32xf32>
    %c0_44 = arith.constant 0 : index
    %c0_45 = arith.constant 0 : index
    %55 = vector.load %arg4[%c0_44, %c0_45] : memref<1x32xf32, #tpu.memory_space<vmem>>, vector<1x32xf32>
    %c0_46 = arith.constant 0 : index
    %c0_47 = arith.constant 0 : index
    %56 = vector.load %arg5[%c0_46, %c0_47] : memref<1x32xf32, #tpu.memory_space<vmem>>, vector<1x32xf32>
    %cst = arith.constant dense<0.000000e+00> : vector<16xf32>
    %57 = vector.multi_reduction <add>, %54, %cst [1] : vector<16x32xf32> to vector<16xf32>
    %58 = vector.shape_cast %57 : vector<16xf32> to vector<16x1xf32>
    %cst_48 = arith.constant 3.200000e+01 : f32
    %59 = vector.broadcast %cst_48 : f32 to vector<16x1xf32>
    %60 = arith.divf %58, %59 : vector<16x1xf32>
    %61 = vector.broadcast %60 : vector<16x1xf32> to vector<16x32xf32>
    %62 = arith.subf %54, %61 : vector<16x32xf32>
    %63 = arith.mulf %62, %62 : vector<16x32xf32>
    %cst_49 = arith.constant dense<0.000000e+00> : vector<16xf32>
    %64 = vector.multi_reduction <add>, %63, %cst_49 [1] : vector<16x32xf32> to vector<16xf32>
    %65 = vector.shape_cast %64 : vector<16xf32> to vector<16x1xf32>
    %cst_50 = arith.constant 3.200000e+01 : f32
    %66 = vector.broadcast %cst_50 : f32 to vector<16x1xf32>
    %67 = arith.divf %65, %66 : vector<16x1xf32>
    %cst_51 = arith.constant 9.99999996E-13 : f32
    %68 = vector.broadcast %cst_51 : f32 to vector<16x1xf32>
    %69 = arith.addf %67, %68 : vector<16x1xf32>
    %70 = math.rsqrt %69 : vector<16x1xf32>
    %71 = vector.broadcast %70 : vector<16x1xf32> to vector<16x32xf32>
    %72 = arith.mulf %62, %71 : vector<16x32xf32>
    %73 = vector.broadcast %55 : vector<1x32xf32> to vector<16x32xf32>
    %74 = arith.mulf %72, %73 : vector<16x32xf32>
    %75 = vector.broadcast %56 : vector<1x32xf32> to vector<16x32xf32>
    %76 = arith.addf %74, %75 : vector<16x32xf32>
    %c0_52 = arith.constant 0 : index
    %c0_53 = arith.constant 0 : index
    %77 = vector.load %arg6[%c0_52, %c0_53] : memref<32x96xf32, #tpu.memory_space<vmem>>, vector<32x96xf32>
    %cst_54 = arith.constant dense<0.000000e+00> : vector<16x96xf32>
    %78 = tpu.matmul %76, %77, %cst_54 {dimension_numbers = #tpu.dot_dimension_numbers<[1], [0], [0], [1], [0, 0, 1, 1], [], []>} : vector<16x32xf32>, vector<32x96xf32>, vector<16x96xf32> -> vector<16x96xf32>
    %c0_55 = arith.constant 0 : index
    %c0_56 = arith.constant 0 : index
    %79 = vector.load %arg7[%c0_55, %c0_56] : memref<1x96xf32, #tpu.memory_space<vmem>>, vector<1x96xf32>
    %80 = vector.broadcast %79 : vector<1x96xf32> to vector<16x96xf32>
    %81 = arith.addf %78, %80 : vector<16x96xf32>
    %82 = vector.extract_strided_slice %81 {offsets = [0, 0], sizes = [16, 32], strides = [1, 1]} : vector<16x96xf32> to vector<16x32xf32>
    %83 = vector.shape_cast %82 : vector<16x32xf32> to vector<2x8x32xf32>
    %84 = vector.extract_strided_slice %81 {offsets = [0, 32], sizes = [16, 32], strides = [1, 1]} : vector<16x96xf32> to vector<16x32xf32>
    %85 = vector.shape_cast %84 : vector<16x32xf32> to vector<2x8x32xf32>
    %86 = vector.extract_strided_slice %81 {offsets = [0, 64], sizes = [16, 32], strides = [1, 1]} : vector<16x96xf32> to vector<16x32xf32>
    %87 = vector.shape_cast %86 : vector<16x32xf32> to vector<2x8x32xf32>
    %88 = vector.extract_strided_slice %83 {offsets = [0, 0, 0], sizes = [2, 8, 16], strides = [1, 1, 1]} : vector<2x8x32xf32> to vector<2x8x16xf32>
    %89 = vector.extract_strided_slice %85 {offsets = [0, 0, 0], sizes = [2, 8, 16], strides = [1, 1, 1]} : vector<2x8x32xf32> to vector<2x8x16xf32>
    %90 = vector.extract_strided_slice %87 {offsets = [0, 0, 0], sizes = [2, 8, 16], strides = [1, 1, 1]} : vector<2x8x32xf32> to vector<2x8x16xf32>
    "tpu.trace_start"() <{level = 10 : i32, message = "bqd,bkd->bqk"}> : () -> ()
    %cst_57 = arith.constant dense<0.000000e+00> : vector<2x8x8xf32>
    %91 = tpu.matmul %88, %89, %cst_57 {dimension_numbers = #tpu.dot_dimension_numbers<[2], [2], [1], [1], [0, 0, 0, 1, 1, 1], [0], [0]>} : vector<2x8x16xf32>, vector<2x8x16xf32>, vector<2x8x8xf32> -> vector<2x8x8xf32>
    "tpu.trace_stop"() : () -> ()
    %cst_58 = arith.constant dense<0xFF800000> : vector<2x8xf32>
    %92 = vector.multi_reduction <maximumf>, %91, %cst_58 [2] : vector<2x8x8xf32> to vector<2x8xf32>
    %93 = vector.shape_cast %92 : vector<2x8xf32> to vector<2x8x1xf32>
    %94 = vector.broadcast %93 : vector<2x8x1xf32> to vector<2x8x8xf32>
    %95 = arith.subf %91, %94 : vector<2x8x8xf32>
    %96 = math.exp %95 : vector<2x8x8xf32>
    %cst_59 = arith.constant dense<0.000000e+00> : vector<2x8xf32>
    %97 = vector.multi_reduction <add>, %96, %cst_59 [2] : vector<2x8x8xf32> to vector<2x8xf32>
    %98 = vector.shape_cast %97 : vector<2x8xf32> to vector<2x8x1xf32>
    %99 = tpu.reciprocal %98 {approx = true} : vector<2x8x1xf32> -> vector<2x8x1xf32>
    %100 = vector.broadcast %99 : vector<2x8x1xf32> to vector<2x8x8xf32>
    %101 = arith.mulf %96, %100 : vector<2x8x8xf32>
    "tpu.trace_start"() <{level = 10 : i32, message = "bqk,bkd->bqd"}> : () -> ()
    %cst_60 = arith.constant dense<0.000000e+00> : vector<2x8x16xf32>
    %102 = tpu.matmul %101, %90, %cst_60 {dimension_numbers = #tpu.dot_dimension_numbers<[2], [1], [1], [2], [0, 0, 0, 1, 1, 2], [0], [0]>} : vector<2x8x8xf32>, vector<2x8x16xf32>, vector<2x8x16xf32> -> vector<2x8x16xf32>
    "tpu.trace_stop"() : () -> ()
    %103 = vector.extract_strided_slice %83 {offsets = [0, 0, 16], sizes = [2, 8, 16], strides = [1, 1, 1]} : vector<2x8x32xf32> to vector<2x8x16xf32>
    %104 = vector.extract_strided_slice %85 {offsets = [0, 0, 16], sizes = [2, 8, 16], strides = [1, 1, 1]} : vector<2x8x32xf32> to vector<2x8x16xf32>
    %105 = vector.extract_strided_slice %87 {offsets = [0, 0, 16], sizes = [2, 8, 16], strides = [1, 1, 1]} : vector<2x8x32xf32> to vector<2x8x16xf32>
    "tpu.trace_start"() <{level = 10 : i32, message = "bqd,bkd->bqk"}> : () -> ()
    %cst_61 = arith.constant dense<0.000000e+00> : vector<2x8x8xf32>
    %106 = tpu.matmul %103, %104, %cst_61 {dimension_numbers = #tpu.dot_dimension_numbers<[2], [2], [1], [1], [0, 0, 0, 1, 1, 1], [0], [0]>} : vector<2x8x16xf32>, vector<2x8x16xf32>, vector<2x8x8xf32> -> vector<2x8x8xf32>
    "tpu.trace_stop"() : () -> ()
    %cst_62 = arith.constant dense<0xFF800000> : vector<2x8xf32>
    %107 = vector.multi_reduction <maximumf>, %106, %cst_62 [2] : vector<2x8x8xf32> to vector<2x8xf32>
    %108 = vector.shape_cast %107 : vector<2x8xf32> to vector<2x8x1xf32>
    %109 = vector.broadcast %108 : vector<2x8x1xf32> to vector<2x8x8xf32>
    %110 = arith.subf %106, %109 : vector<2x8x8xf32>
    %111 = math.exp %110 : vector<2x8x8xf32>
    %cst_63 = arith.constant dense<0.000000e+00> : vector<2x8xf32>
    %112 = vector.multi_reduction <add>, %111, %cst_63 [2] : vector<2x8x8xf32> to vector<2x8xf32>
    %113 = vector.shape_cast %112 : vector<2x8xf32> to vector<2x8x1xf32>
    %114 = tpu.reciprocal %113 {approx = true} : vector<2x8x1xf32> -> vector<2x8x1xf32>
    %115 = vector.broadcast %114 : vector<2x8x1xf32> to vector<2x8x8xf32>
    %116 = arith.mulf %111, %115 : vector<2x8x8xf32>
    "tpu.trace_start"() <{level = 10 : i32, message = "bqk,bkd->bqd"}> : () -> ()
    %cst_64 = arith.constant dense<0.000000e+00> : vector<2x8x16xf32>
    %117 = tpu.matmul %116, %105, %cst_64 {dimension_numbers = #tpu.dot_dimension_numbers<[2], [1], [1], [2], [0, 0, 0, 1, 1, 2], [0], [0]>} : vector<2x8x8xf32>, vector<2x8x16xf32>, vector<2x8x16xf32> -> vector<2x8x16xf32>
    "tpu.trace_stop"() : () -> ()
    %118 = tpu.concatenate %102, %117 in 2 : vector<2x8x16xf32>, vector<2x8x16xf32> -> vector<2x8x32xf32>
    %119 = vector.shape_cast %118 : vector<2x8x32xf32> to vector<16x32xf32>
    %c0_65 = arith.constant 0 : index
    %c0_66 = arith.constant 0 : index
    %120 = vector.load %arg8[%c0_65, %c0_66] : memref<32x32xf32, #tpu.memory_space<vmem>>, vector<32x32xf32>
    %cst_67 = arith.constant dense<0.000000e+00> : vector<16x32xf32>
    %121 = tpu.matmul %119, %120, %cst_67 {dimension_numbers = #tpu.dot_dimension_numbers<[1], [0], [0], [1], [0, 0, 1, 1], [], []>} : vector<16x32xf32>, vector<32x32xf32>, vector<16x32xf32> -> vector<16x32xf32>
    %c0_68 = arith.constant 0 : index
    %c0_69 = arith.constant 0 : index
    %122 = vector.load %arg9[%c0_68, %c0_69] : memref<1x32xf32, #tpu.memory_space<vmem>>, vector<1x32xf32>
    %123 = vector.broadcast %122 : vector<1x32xf32> to vector<16x32xf32>
    %124 = arith.addf %121, %123 : vector<16x32xf32>
    %125 = arith.addf %76, %124 : vector<16x32xf32>
    %c0_70 = arith.constant 0 : index
    %c0_71 = arith.constant 0 : index
    %126 = vector.load %arg10[%c0_70, %c0_71] : memref<1x32xf32, #tpu.memory_space<vmem>>, vector<1x32xf32>
    %c0_72 = arith.constant 0 : index
    %c0_73 = arith.constant 0 : index
    %127 = vector.load %arg11[%c0_72, %c0_73] : memref<1x32xf32, #tpu.memory_space<vmem>>, vector<1x32xf32>
    %cst_74 = arith.constant dense<0.000000e+00> : vector<16xf32>
    %128 = vector.multi_reduction <add>, %125, %cst_74 [1] : vector<16x32xf32> to vector<16xf32>
    %129 = vector.shape_cast %128 : vector<16xf32> to vector<16x1xf32>
    %cst_75 = arith.constant 3.200000e+01 : f32
    %130 = vector.broadcast %cst_75 : f32 to vector<16x1xf32>
    %131 = arith.divf %129, %130 : vector<16x1xf32>
    %132 = vector.broadcast %131 : vector<16x1xf32> to vector<16x32xf32>
    %133 = arith.subf %125, %132 : vector<16x32xf32>
    %134 = arith.mulf %133, %133 : vector<16x32xf32>
    %cst_76 = arith.constant dense<0.000000e+00> : vector<16xf32>
    %135 = vector.multi_reduction <add>, %134, %cst_76 [1] : vector<16x32xf32> to vector<16xf32>
    %136 = vector.shape_cast %135 : vector<16xf32> to vector<16x1xf32>
    %cst_77 = arith.constant 3.200000e+01 : f32
    %137 = vector.broadcast %cst_77 : f32 to vector<16x1xf32>
    %138 = arith.divf %136, %137 : vector<16x1xf32>
    %cst_78 = arith.constant 9.99999996E-13 : f32
    %139 = vector.broadcast %cst_78 : f32 to vector<16x1xf32>
    %140 = arith.addf %138, %139 : vector<16x1xf32>
    %141 = math.rsqrt %140 : vector<16x1xf32>
    %142 = vector.broadcast %141 : vector<16x1xf32> to vector<16x32xf32>
    %143 = arith.mulf %133, %142 : vector<16x32xf32>
    %144 = vector.broadcast %126 : vector<1x32xf32> to vector<16x32xf32>
    %145 = arith.mulf %143, %144 : vector<16x32xf32>
    %146 = vector.broadcast %127 : vector<1x32xf32> to vector<16x32xf32>
    %147 = arith.addf %145, %146 : vector<16x32xf32>
    %c0_79 = arith.constant 0 : index
    %c0_80 = arith.constant 0 : index
    %148 = vector.load %arg12[%c0_79, %c0_80] : memref<32x64xf32, #tpu.memory_space<vmem>>, vector<32x64xf32>
    %cst_81 = arith.constant dense<0.000000e+00> : vector<16x64xf32>
    %149 = tpu.matmul %147, %148, %cst_81 {dimension_numbers = #tpu.dot_dimension_numbers<[1], [0], [0], [1], [0, 0, 1, 1], [], []>} : vector<16x32xf32>, vector<32x64xf32>, vector<16x64xf32> -> vector<16x64xf32>
    %c0_82 = arith.constant 0 : index
    %c0_83 = arith.constant 0 : index
    %150 = vector.load %arg13[%c0_82, %c0_83] : memref<1x64xf32, #tpu.memory_space<vmem>>, vector<1x64xf32>
    %151 = vector.broadcast %150 : vector<1x64xf32> to vector<16x64xf32>
    %152 = arith.addf %149, %151 : vector<16x64xf32>
    %cst_84 = arith.constant 5.000000e-01 : f32
    %153 = vector.broadcast %cst_84 : f32 to vector<16x64xf32>
    %154 = arith.mulf %153, %152 : vector<16x64xf32>
    %cst_85 = arith.constant 4.471500e-02 : f32
    %155 = vector.broadcast %cst_85 : f32 to vector<16x64xf32>
    %156 = arith.mulf %155, %152 : vector<16x64xf32>
    %157 = arith.mulf %156, %152 : vector<16x64xf32>
    %158 = arith.mulf %157, %152 : vector<16x64xf32>
    %159 = arith.addf %152, %158 : vector<16x64xf32>
    %cst_86 = arith.constant 0.797884583 : f32
    %160 = vector.broadcast %cst_86 : f32 to vector<16x64xf32>
    %161 = arith.mulf %160, %159 : vector<16x64xf32>
    %162 = math.tanh %161 : vector<16x64xf32>
    %cst_87 = arith.constant 1.000000e+00 : f32
    %163 = vector.broadcast %cst_87 : f32 to vector<16x64xf32>
    %164 = arith.addf %163, %162 : vector<16x64xf32>
    %165 = arith.mulf %154, %164 : vector<16x64xf32>
    %c0_88 = arith.constant 0 : index
    %c0_89 = arith.constant 0 : index
    %166 = vector.load %arg14[%c0_88, %c0_89] : memref<64x32xf32, #tpu.memory_space<vmem>>, vector<64x32xf32>
    %cst_90 = arith.constant dense<0.000000e+00> : vector<16x32xf32>
    %167 = tpu.matmul %165, %166, %cst_90 {dimension_numbers = #tpu.dot_dimension_numbers<[1], [0], [0], [1], [0, 0, 1, 1], [], []>} : vector<16x64xf32>, vector<64x32xf32>, vector<16x32xf32> -> vector<16x32xf32>
    %c0_91 = arith.constant 0 : index
    %c0_92 = arith.constant 0 : index
    %168 = vector.load %arg15[%c0_91, %c0_92] : memref<1x32xf32, #tpu.memory_space<vmem>>, vector<1x32xf32>
    %169 = vector.broadcast %168 : vector<1x32xf32> to vector<16x32xf32>
    %170 = arith.addf %167, %169 : vector<16x32xf32>
    %171 = arith.addf %147, %170 : vector<16x32xf32>
    %c0_93 = arith.constant 0 : index
    %c0_94 = arith.constant 0 : index
    %172 = vector.load %arg16[%c0_93, %c0_94] : memref<1x32xf32, #tpu.memory_space<vmem>>, vector<1x32xf32>
    %c0_95 = arith.constant 0 : index
    %c0_96 = arith.constant 0 : index
    %173 = vector.load %arg17[%c0_95, %c0_96] : memref<1x32xf32, #tpu.memory_space<vmem>>, vector<1x32xf32>
    %cst_97 = arith.constant dense<0.000000e+00> : vector<16xf32>
    %174 = vector.multi_reduction <add>, %171, %cst_97 [1] : vector<16x32xf32> to vector<16xf32>
    %175 = vector.shape_cast %174 : vector<16xf32> to vector<16x1xf32>
    %cst_98 = arith.constant 3.200000e+01 : f32
    %176 = vector.broadcast %cst_98 : f32 to vector<16x1xf32>
    %177 = arith.divf %175, %176 : vector<16x1xf32>
    %178 = vector.broadcast %177 : vector<16x1xf32> to vector<16x32xf32>
    %179 = arith.subf %171, %178 : vector<16x32xf32>
    %180 = arith.mulf %179, %179 : vector<16x32xf32>
    %cst_99 = arith.constant dense<0.000000e+00> : vector<16xf32>
    %181 = vector.multi_reduction <add>, %180, %cst_99 [1] : vector<16x32xf32> to vector<16xf32>
    %182 = vector.shape_cast %181 : vector<16xf32> to vector<16x1xf32>
    %cst_100 = arith.constant 3.200000e+01 : f32
    %183 = vector.broadcast %cst_100 : f32 to vector<16x1xf32>
    %184 = arith.divf %182, %183 : vector<16x1xf32>
    %cst_101 = arith.constant 9.99999996E-13 : f32
    %185 = vector.broadcast %cst_101 : f32 to vector<16x1xf32>
    %186 = arith.addf %184, %185 : vector<16x1xf32>
    %187 = math.rsqrt %186 : vector<16x1xf32>
    %188 = vector.broadcast %187 : vector<16x1xf32> to vector<16x32xf32>
    %189 = arith.mulf %179, %188 : vector<16x32xf32>
    %190 = vector.broadcast %172 : vector<1x32xf32> to vector<16x32xf32>
    %191 = arith.mulf %189, %190 : vector<16x32xf32>
    %192 = vector.broadcast %173 : vector<1x32xf32> to vector<16x32xf32>
    %193 = arith.addf %191, %192 : vector<16x32xf32>
    %c0_102 = arith.constant 0 : index
    %c0_103 = arith.constant 0 : index
    %194 = vector.load %arg18[%c0_102, %c0_103] : memref<32x96xf32, #tpu.memory_space<vmem>>, vector<32x96xf32>
    %cst_104 = arith.constant dense<0.000000e+00> : vector<16x96xf32>
    %195 = tpu.matmul %193, %194, %cst_104 {dimension_numbers = #tpu.dot_dimension_numbers<[1], [0], [0], [1], [0, 0, 1, 1], [], []>} : vector<16x32xf32>, vector<32x96xf32>, vector<16x96xf32> -> vector<16x96xf32>
    %c0_105 = arith.constant 0 : index
    %c0_106 = arith.constant 0 : index
    %196 = vector.load %arg19[%c0_105, %c0_106] : memref<1x96xf32, #tpu.memory_space<vmem>>, vector<1x96xf32>
    %197 = vector.broadcast %196 : vector<1x96xf32> to vector<16x96xf32>
    %198 = arith.addf %195, %197 : vector<16x96xf32>
    %199 = vector.extract_strided_slice %198 {offsets = [0, 0], sizes = [16, 32], strides = [1, 1]} : vector<16x96xf32> to vector<16x32xf32>
    %200 = vector.shape_cast %199 : vector<16x32xf32> to vector<2x8x32xf32>
    %201 = vector.extract_strided_slice %198 {offsets = [0, 32], sizes = [16, 32], strides = [1, 1]} : vector<16x96xf32> to vector<16x32xf32>
    %202 = vector.shape_cast %201 : vector<16x32xf32> to vector<2x8x32xf32>
    %203 = vector.extract_strided_slice %198 {offsets = [0, 64], sizes = [16, 32], strides = [1, 1]} : vector<16x96xf32> to vector<16x32xf32>
    %204 = vector.shape_cast %203 : vector<16x32xf32> to vector<2x8x32xf32>
    %205 = vector.extract_strided_slice %200 {offsets = [0, 0, 0], sizes = [2, 8, 16], strides = [1, 1, 1]} : vector<2x8x32xf32> to vector<2x8x16xf32>
    %206 = vector.extract_strided_slice %202 {offsets = [0, 0, 0], sizes = [2, 8, 16], strides = [1, 1, 1]} : vector<2x8x32xf32> to vector<2x8x16xf32>
    %207 = vector.extract_strided_slice %204 {offsets = [0, 0, 0], sizes = [2, 8, 16], strides = [1, 1, 1]} : vector<2x8x32xf32> to vector<2x8x16xf32>
    "tpu.trace_start"() <{level = 10 : i32, message = "bqd,bkd->bqk"}> : () -> ()
    %cst_107 = arith.constant dense<0.000000e+00> : vector<2x8x8xf32>
    %208 = tpu.matmul %205, %206, %cst_107 {dimension_numbers = #tpu.dot_dimension_numbers<[2], [2], [1], [1], [0, 0, 0, 1, 1, 1], [0], [0]>} : vector<2x8x16xf32>, vector<2x8x16xf32>, vector<2x8x8xf32> -> vector<2x8x8xf32>
    "tpu.trace_stop"() : () -> ()
    %cst_108 = arith.constant dense<0xFF800000> : vector<2x8xf32>
    %209 = vector.multi_reduction <maximumf>, %208, %cst_108 [2] : vector<2x8x8xf32> to vector<2x8xf32>
    %210 = vector.shape_cast %209 : vector<2x8xf32> to vector<2x8x1xf32>
    %211 = vector.broadcast %210 : vector<2x8x1xf32> to vector<2x8x8xf32>
    %212 = arith.subf %208, %211 : vector<2x8x8xf32>
    %213 = math.exp %212 : vector<2x8x8xf32>
    %cst_109 = arith.constant dense<0.000000e+00> : vector<2x8xf32>
    %214 = vector.multi_reduction <add>, %213, %cst_109 [2] : vector<2x8x8xf32> to vector<2x8xf32>
    %215 = vector.shape_cast %214 : vector<2x8xf32> to vector<2x8x1xf32>
    %216 = tpu.reciprocal %215 {approx = true} : vector<2x8x1xf32> -> vector<2x8x1xf32>
    %217 = vector.broadcast %216 : vector<2x8x1xf32> to vector<2x8x8xf32>
    %218 = arith.mulf %213, %217 : vector<2x8x8xf32>
    "tpu.trace_start"() <{level = 10 : i32, message = "bqk,bkd->bqd"}> : () -> ()
    %cst_110 = arith.constant dense<0.000000e+00> : vector<2x8x16xf32>
    %219 = tpu.matmul %218, %207, %cst_110 {dimension_numbers = #tpu.dot_dimension_numbers<[2], [1], [1], [2], [0, 0, 0, 1, 1, 2], [0], [0]>} : vector<2x8x8xf32>, vector<2x8x16xf32>, vector<2x8x16xf32> -> vector<2x8x16xf32>
    "tpu.trace_stop"() : () -> ()
    %220 = vector.extract_strided_slice %200 {offsets = [0, 0, 16], sizes = [2, 8, 16], strides = [1, 1, 1]} : vector<2x8x32xf32> to vector<2x8x16xf32>
    %221 = vector.extract_strided_slice %202 {offsets = [0, 0, 16], sizes = [2, 8, 16], strides = [1, 1, 1]} : vector<2x8x32xf32> to vector<2x8x16xf32>
    %222 = vector.extract_strided_slice %204 {offsets = [0, 0, 16], sizes = [2, 8, 16], strides = [1, 1, 1]} : vector<2x8x32xf32> to vector<2x8x16xf32>
    "tpu.trace_start"() <{level = 10 : i32, message = "bqd,bkd->bqk"}> : () -> ()
    %cst_111 = arith.constant dense<0.000000e+00> : vector<2x8x8xf32>
    %223 = tpu.matmul %220, %221, %cst_111 {dimension_numbers = #tpu.dot_dimension_numbers<[2], [2], [1], [1], [0, 0, 0, 1, 1, 1], [0], [0]>} : vector<2x8x16xf32>, vector<2x8x16xf32>, vector<2x8x8xf32> -> vector<2x8x8xf32>
    "tpu.trace_stop"() : () -> ()
    %cst_112 = arith.constant dense<0xFF800000> : vector<2x8xf32>
    %224 = vector.multi_reduction <maximumf>, %223, %cst_112 [2] : vector<2x8x8xf32> to vector<2x8xf32>
    %225 = vector.shape_cast %224 : vector<2x8xf32> to vector<2x8x1xf32>
    %226 = vector.broadcast %225 : vector<2x8x1xf32> to vector<2x8x8xf32>
    %227 = arith.subf %223, %226 : vector<2x8x8xf32>
    %228 = math.exp %227 : vector<2x8x8xf32>
    %cst_113 = arith.constant dense<0.000000e+00> : vector<2x8xf32>
    %229 = vector.multi_reduction <add>, %228, %cst_113 [2] : vector<2x8x8xf32> to vector<2x8xf32>
    %230 = vector.shape_cast %229 : vector<2x8xf32> to vector<2x8x1xf32>
    %231 = tpu.reciprocal %230 {approx = true} : vector<2x8x1xf32> -> vector<2x8x1xf32>
    %232 = vector.broadcast %231 : vector<2x8x1xf32> to vector<2x8x8xf32>
    %233 = arith.mulf %228, %232 : vector<2x8x8xf32>
    "tpu.trace_start"() <{level = 10 : i32, message = "bqk,bkd->bqd"}> : () -> ()
    %cst_114 = arith.constant dense<0.000000e+00> : vector<2x8x16xf32>
    %234 = tpu.matmul %233, %222, %cst_114 {dimension_numbers = #tpu.dot_dimension_numbers<[2], [1], [1], [2], [0, 0, 0, 1, 1, 2], [0], [0]>} : vector<2x8x8xf32>, vector<2x8x16xf32>, vector<2x8x16xf32> -> vector<2x8x16xf32>
    "tpu.trace_stop"() : () -> ()
    %235 = tpu.concatenate %219, %234 in 2 : vector<2x8x16xf32>, vector<2x8x16xf32> -> vector<2x8x32xf32>
    %236 = vector.shape_cast %235 : vector<2x8x32xf32> to vector<16x32xf32>
    %c0_115 = arith.constant 0 : index
    %c0_116 = arith.constant 0 : index
    %237 = vector.load %arg20[%c0_115, %c0_116] : memref<32x32xf32, #tpu.memory_space<vmem>>, vector<32x32xf32>
    %cst_117 = arith.constant dense<0.000000e+00> : vector<16x32xf32>
    %238 = tpu.matmul %236, %237, %cst_117 {dimension_numbers = #tpu.dot_dimension_numbers<[1], [0], [0], [1], [0, 0, 1, 1], [], []>} : vector<16x32xf32>, vector<32x32xf32>, vector<16x32xf32> -> vector<16x32xf32>
    %c0_118 = arith.constant 0 : index
    %c0_119 = arith.constant 0 : index
    %239 = vector.load %arg21[%c0_118, %c0_119] : memref<1x32xf32, #tpu.memory_space<vmem>>, vector<1x32xf32>
    %240 = vector.broadcast %239 : vector<1x32xf32> to vector<16x32xf32>
    %241 = arith.addf %238, %240 : vector<16x32xf32>
    %242 = arith.addf %193, %241 : vector<16x32xf32>
    %c0_120 = arith.constant 0 : index
    %c0_121 = arith.constant 0 : index
    %243 = vector.load %arg22[%c0_120, %c0_121] : memref<1x32xf32, #tpu.memory_space<vmem>>, vector<1x32xf32>
    %c0_122 = arith.constant 0 : index
    %c0_123 = arith.constant 0 : index
    %244 = vector.load %arg23[%c0_122, %c0_123] : memref<1x32xf32, #tpu.memory_space<vmem>>, vector<1x32xf32>
    %cst_124 = arith.constant dense<0.000000e+00> : vector<16xf32>
    %245 = vector.multi_reduction <add>, %242, %cst_124 [1] : vector<16x32xf32> to vector<16xf32>
    %246 = vector.shape_cast %245 : vector<16xf32> to vector<16x1xf32>
    %cst_125 = arith.constant 3.200000e+01 : f32
    %247 = vector.broadcast %cst_125 : f32 to vector<16x1xf32>
    %248 = arith.divf %246, %247 : vector<16x1xf32>
    %249 = vector.broadcast %248 : vector<16x1xf32> to vector<16x32xf32>
    %250 = arith.subf %242, %249 : vector<16x32xf32>
    %251 = arith.mulf %250, %250 : vector<16x32xf32>
    %cst_126 = arith.constant dense<0.000000e+00> : vector<16xf32>
    %252 = vector.multi_reduction <add>, %251, %cst_126 [1] : vector<16x32xf32> to vector<16xf32>
    %253 = vector.shape_cast %252 : vector<16xf32> to vector<16x1xf32>
    %cst_127 = arith.constant 3.200000e+01 : f32
    %254 = vector.broadcast %cst_127 : f32 to vector<16x1xf32>
    %255 = arith.divf %253, %254 : vector<16x1xf32>
    %cst_128 = arith.constant 9.99999996E-13 : f32
    %256 = vector.broadcast %cst_128 : f32 to vector<16x1xf32>
    %257 = arith.addf %255, %256 : vector<16x1xf32>
    %258 = math.rsqrt %257 : vector<16x1xf32>
    %259 = vector.broadcast %258 : vector<16x1xf32> to vector<16x32xf32>
    %260 = arith.mulf %250, %259 : vector<16x32xf32>
    %261 = vector.broadcast %243 : vector<1x32xf32> to vector<16x32xf32>
    %262 = arith.mulf %260, %261 : vector<16x32xf32>
    %263 = vector.broadcast %244 : vector<1x32xf32> to vector<16x32xf32>
    %264 = arith.addf %262, %263 : vector<16x32xf32>
    %c0_129 = arith.constant 0 : index
    %c0_130 = arith.constant 0 : index
    %265 = vector.load %arg24[%c0_129, %c0_130] : memref<32x64xf32, #tpu.memory_space<vmem>>, vector<32x64xf32>
    %cst_131 = arith.constant dense<0.000000e+00> : vector<16x64xf32>
    %266 = tpu.matmul %264, %265, %cst_131 {dimension_numbers = #tpu.dot_dimension_numbers<[1], [0], [0], [1], [0, 0, 1, 1], [], []>} : vector<16x32xf32>, vector<32x64xf32>, vector<16x64xf32> -> vector<16x64xf32>
    %c0_132 = arith.constant 0 : index
    %c0_133 = arith.constant 0 : index
    %267 = vector.load %arg25[%c0_132, %c0_133] : memref<1x64xf32, #tpu.memory_space<vmem>>, vector<1x64xf32>
    %268 = vector.broadcast %267 : vector<1x64xf32> to vector<16x64xf32>
    %269 = arith.addf %266, %268 : vector<16x64xf32>
    %cst_134 = arith.constant 5.000000e-01 : f32
    %270 = vector.broadcast %cst_134 : f32 to vector<16x64xf32>
    %271 = arith.mulf %270, %269 : vector<16x64xf32>
    %cst_135 = arith.constant 4.471500e-02 : f32
    %272 = vector.broadcast %cst_135 : f32 to vector<16x64xf32>
    %273 = arith.mulf %272, %269 : vector<16x64xf32>
    %274 = arith.mulf %273, %269 : vector<16x64xf32>
    %275 = arith.mulf %274, %269 : vector<16x64xf32>
    %276 = arith.addf %269, %275 : vector<16x64xf32>
    %cst_136 = arith.constant 0.797884583 : f32
    %277 = vector.broadcast %cst_136 : f32 to vector<16x64xf32>
    %278 = arith.mulf %277, %276 : vector<16x64xf32>
    %279 = math.tanh %278 : vector<16x64xf32>
    %cst_137 = arith.constant 1.000000e+00 : f32
    %280 = vector.broadcast %cst_137 : f32 to vector<16x64xf32>
    %281 = arith.addf %280, %279 : vector<16x64xf32>
    %282 = arith.mulf %271, %281 : vector<16x64xf32>
    %c0_138 = arith.constant 0 : index
    %c0_139 = arith.constant 0 : index
    %283 = vector.load %arg26[%c0_138, %c0_139] : memref<64x32xf32, #tpu.memory_space<vmem>>, vector<64x32xf32>
    %cst_140 = arith.constant dense<0.000000e+00> : vector<16x32xf32>
    %284 = tpu.matmul %282, %283, %cst_140 {dimension_numbers = #tpu.dot_dimension_numbers<[1], [0], [0], [1], [0, 0, 1, 1], [], []>} : vector<16x64xf32>, vector<64x32xf32>, vector<16x32xf32> -> vector<16x32xf32>
    %c0_141 = arith.constant 0 : index
    %c0_142 = arith.constant 0 : index
    %285 = vector.load %arg27[%c0_141, %c0_142] : memref<1x32xf32, #tpu.memory_space<vmem>>, vector<1x32xf32>
    %286 = vector.broadcast %285 : vector<1x32xf32> to vector<16x32xf32>
    %287 = arith.addf %284, %286 : vector<16x32xf32>
    %288 = arith.addf %264, %287 : vector<16x32xf32>
    %c0_143 = arith.constant 0 : index
    %c0_144 = arith.constant 0 : index
    %289 = vector.load %arg28[%c0_143, %c0_144] : memref<1x32xf32, #tpu.memory_space<vmem>>, vector<1x32xf32>
    %c0_145 = arith.constant 0 : index
    %c0_146 = arith.constant 0 : index
    %290 = vector.load %arg29[%c0_145, %c0_146] : memref<1x32xf32, #tpu.memory_space<vmem>>, vector<1x32xf32>
    %cst_147 = arith.constant dense<0.000000e+00> : vector<16xf32>
    %291 = vector.multi_reduction <add>, %288, %cst_147 [1] : vector<16x32xf32> to vector<16xf32>
    %292 = vector.shape_cast %291 : vector<16xf32> to vector<16x1xf32>
    %cst_148 = arith.constant 3.200000e+01 : f32
    %293 = vector.broadcast %cst_148 : f32 to vector<16x1xf32>
    %294 = arith.divf %292, %293 : vector<16x1xf32>
    %295 = vector.broadcast %294 : vector<16x1xf32> to vector<16x32xf32>
    %296 = arith.subf %288, %295 : vector<16x32xf32>
    %297 = arith.mulf %296, %296 : vector<16x32xf32>
    %cst_149 = arith.constant dense<0.000000e+00> : vector<16xf32>
    %298 = vector.multi_reduction <add>, %297, %cst_149 [1] : vector<16x32xf32> to vector<16xf32>
    %299 = vector.shape_cast %298 : vector<16xf32> to vector<16x1xf32>
    %cst_150 = arith.constant 3.200000e+01 : f32
    %300 = vector.broadcast %cst_150 : f32 to vector<16x1xf32>
    %301 = arith.divf %299, %300 : vector<16x1xf32>
    %cst_151 = arith.constant 9.99999996E-13 : f32
    %302 = vector.broadcast %cst_151 : f32 to vector<16x1xf32>
    %303 = arith.addf %301, %302 : vector<16x1xf32>
    %304 = math.rsqrt %303 : vector<16x1xf32>
    %305 = vector.broadcast %304 : vector<16x1xf32> to vector<16x32xf32>
    %306 = arith.mulf %296, %305 : vector<16x32xf32>
    %307 = vector.broadcast %289 : vector<1x32xf32> to vector<16x32xf32>
    %308 = arith.mulf %306, %307 : vector<16x32xf32>
    %309 = vector.broadcast %290 : vector<1x32xf32> to vector<16x32xf32>
    %310 = arith.addf %308, %309 : vector<16x32xf32>
    %311 = vector.shape_cast %310 : vector<16x32xf32> to vector<2x8x32xf32>
    %cst_152 = arith.constant dense<0.000000e+00> : vector<2x32xf32>
    %312 = vector.multi_reduction <add>, %311, %cst_152 [1] : vector<2x8x32xf32> to vector<2x32xf32>
    %cst_153 = arith.constant 8.000000e+00 : f32
    %313 = vector.broadcast %cst_153 : f32 to vector<2x32xf32>
    %314 = arith.divf %312, %313 : vector<2x32xf32>
    %c0_154 = arith.constant 0 : index
    %c0_155 = arith.constant 0 : index
    %315 = vector.load %arg30[%c0_154, %c0_155] : memref<2x32xf32, #tpu.memory_space<vmem>>, vector<2x32xf32>
    tpu.vector_store %arg30[%c0_154, %c0_155], %314 {strides = array<i32>} : memref<2x32xf32, #tpu.memory_space<vmem>>, vector<2x32xf32>,
    return
  }
}

</mosaic_0001>

<bundles_post_ra>
// kernel: tpu_custom_call.1
= control target key start
LH: loop header
LB: loop body
LE: loop exit
PB: predicated region body
PF: predicated region fallthrough
CT: control target
= control target key end

     0   :  { %s3261_s6 = smov 1   ;;  %s3262_s10 = smov 2   ;;  %s3770_s0 = inlined_call_operand.smem [shape: u32[31], index: -1, kind: input, shape index: {}] }
   0x1   :  { %s3309_s5 = sld [smem:[%s3770_s0]]   ;;  %s3263_s14 = smov 3  }
   0x2   :  { %s3314_s9 = sld [smem:[%s3770_s0 + %s3261_s6]]   ;;  %s3264_s18 = smov 4  }
   0x3   :  { %s3319_s13 = sld [smem:[%s3770_s0 + %s3262_s10]]   ;;  %s3265_s22 = smov 5  }
   0x4   :  { %s3324_s17 = sld [smem:[%s3770_s0 + %s3263_s14]]   ;;  %s3266_s26 = smov 6  }
   0x5   :  { %s3329_s21 = sld [smem:[%s3770_s0 + %s3264_s18]]   ;;  %s3267_s30 = smov 7  }
   0x6   :  { %s3334_s25 = sld [smem:[%s3770_s0 + %s3265_s22]]   ;;  %s3268_s4 = smov 8  }
   0x7   :  { %s3339_s29 = sld [smem:[%s3770_s0 + %s3266_s26]]   ;;  %s3269_s10 = smov 9  }
   0x8   :  { %s3344_s3 = sld [smem:[%s3770_s0 + %s3267_s30]]   ;;  %s3270_s15 = smov 10  }
   0x9   :  { %s3349_s8 = sld [smem:[%s3770_s0 + %s3268_s4]]   ;;  %s3271_s20 = smov 11  }
   0xa   :  { %s3354_s14 = sld [smem:[%s3770_s0 + %s3269_s10]]   ;;  %s3272_s26 = smov 12  }
   0xb   :  { %s3359_s19 = sld [smem:[%s3770_s0 + %s3270_s15]]   ;;  %s3273_s1 = smov 13  }
   0xc   :  { %s3364_s24 = sld [smem:[%s3770_s0 + %s3271_s20]]   ;;  %s3274_s7 = smov 14  }
   0xd   :  { %s3369_s30 = sld [smem:[%s3770_s0 + %s3272_s26]]   ;;  %s3275_s15 = smov 15  }
   0xe   :  { %s3374_s6 = sld [smem:[%s3770_s0 + %s3273_s1]]   ;;  %s3276_s22 = smov 16  }
   0xf   :  { %s3379_s12 = sld [smem:[%s3770_s0 + %s3274_s7]]   ;;  %s3277_s28 = smov 17  }
  0x10   :  { %s3384_s20 = sld [smem:[%s3770_s0 + %s3275_s15]]   ;;  %s3278_s7 = smov 18  }
  0x11   :  { %s3389_s27 = sld [smem:[%s3770_s0 + %s3276_s22]]   ;;  %s3279_s15 = smov 19  }
  0x12   :  { %s3394_s4 = sld [smem:[%s3770_s0 + %s3277_s28]]   ;;  %s3280_s22 = smov 20  }
  0x13   :  { %s3281_s28 = smov 21  }
  0x14   :  { %3776 = sst [smem:[#allocation8_spill]] %s3374_s6 }
  0x15   :  { %s3399_s6 = sld [smem:[%s3770_s0 + %s3278_s7]]   ;;  %s3282_s7 = smov 22  }
  0x16   :  { %3777 = sst [smem:[#allocation9_spill]] %s3384_s20 }
  0x17   :  { %3778 = sst [smem:[#allocation10_spill]] %s3389_s27 }
  0x18   :  { %3779 = sst [smem:[#allocation11_spill]] %s3394_s4 }
  0x19   :  { %s3404_s20 = sld [smem:[%s3770_s0 + %s3279_s15]]   ;;  %s3283_s15 = smov 23  }
  0x1a   :  { %s3409_s27 = sld [smem:[%s3770_s0 + %s3280_s22]]   ;;  %s3284_s22 = smov 24  }
  0x1b   :  { %3780 = sst [smem:[#allocation12_spill]] %s3399_s6 }
  0x1c   :  { %s3414_s4 = sld [smem:[%s3770_s0 + %s3281_s28]]   ;;  %s3285_s28 = smov 25  }
  0x1d   :  { %s3419_s6 = sld [smem:[%s3770_s0 + %s3282_s7]]   ;;  %s3286_s7 = smov 26  }
  0x1f   :  { %3781 = sst [smem:[#allocation13_spill]] %s3404_s20 }
  0x20   :  { %3782 = sst [smem:[#allocation14_spill]] %s3409_s27 }
  0x21   :  { %s3424_s20 = sld [smem:[%s3770_s0 + %s3283_s15]]   ;;  %s3287_s15 = smov 27  }
  0x22   :  { %3783 = sst [smem:[#allocation15_spill]] %s3414_s4 }
  0x23   :  { %3784 = sst [smem:[#allocation16_spill]] %s3419_s6 }
  0x24   :  { %s3429_s27 = sld [smem:[%s3770_s0 + %s3284_s22]]   ;;  %s3288_s22 = smov 28  }
  0x25   :  { %s3434_s4 = sld [smem:[%s3770_s0 + %s3285_s28]]   ;;  %s3289_s28 = smov 29  }
  0x26   :  { %s3439_s6 = sld [smem:[%s3770_s0 + %s3286_s7]]   ;;  %s3290_s7 = smov 30  }
  0x27   :  { %3785 = sst [smem:[#allocation17_spill]] %s3424_s20 }
  0x28   :  { %s3444_s20 = sld [smem:[%s3770_s0 + %s3287_s15]]  }
  0x2a   :  { %3786 = sst [smem:[#allocation18_spill]] %s3429_s27 }
  0x2b   :  { %3787 = sst [smem:[#allocation19_spill]] %s3434_s4 }
  0x2c   :  { %3788 = sst [smem:[#allocation20_spill]] %s3439_s6 }
  0x2d   :  { %s3449_s27 = sld [smem:[%s3770_s0 + %s3288_s22]]  }
  0x2e   :  { %s3454_s4 = sld [smem:[%s3770_s0 + %s3289_s28]]  }
  0x2f   :  { %s3459_s6 = sld [smem:[%s3770_s0 + %s3290_s7]]  }
  0x33   :  { %3789 = sst [smem:[#allocation21_spill]] %s3449_s27 }
  0x34   :  { %3790 = sst [smem:[#allocation22_spill]] %s3454_s4 }
  0x35   :  { %3791 = sst [smem:[#allocation23_spill]] %s3459_s6 }
  0x36   :  { %66 = vsyncpa [#allocation4], 0 }
  0x37   :  { %67 = vsyncpa [#allocation3], 0  ;;  %s74_s15 = sshll.u32 %s3309_s5, 4  ;;  %s75_s15 = int_to_ptr.vmem [resolvable:$true] %s74_s15 }
  0x38   :  { %s3223_s16 = scalar_lea.vmem %s75_s15, 32  ;;  %p3228_p1 = scmp.lt.s32.totalorder %s75_s15, %s75_s15 }
  0x39   :  { %p3224_p0 = scmp.ne.s32.totalorder %s75_s15, %s3223_s16  ;;  %p3229_p2 = scmp.lt.s32.totalorder %s3223_s16, %s3223_s16 }
  0x3b   :  { %p3230_p3 = por %p3229_p2, %p3228_p1 }
  0x3d   :  { %p3231_p4 = pnand %p3230_p3, %p3224_p0 }
  0x3f   :  { %3234 = shalt.err (!%p3231_p4)
}
  0x40   :  { %s3291_s18 = smov [#allocation2]  }
  0x41   :  { %77 = dma.vmem_to_smem %s75_s15, 32, %s3291_s18, [#allocation4]  }
  0x42   :  { %3257 = dma.done.wait [#allocation4], 32  }
  0x43   :  { %3258 = vsyncadd [#allocation4], 4294967264 }
  0x44   :  { %139 = sfence }
  0x45   :  { %s140_s22 = sld [smem:[#allocation2]]  ;;  %s2697_s0 = sld [smem:[#allocation2 + $0x1]]  ;;  %vm230_vm0 = vcmask 1040384   ;;  %vm232_vm1 = vcmask 1041408   ;;  %vm234_vm2 = vcmask 1042432   ;;  %vm236_vm3 = vcmask 1043456  }
  0x46   :  { %s2698_s23 = sld [smem:[#allocation2 + $0x2]]  ;;  %s2699_s5 = sld [smem:[#allocation2 + $0x3]]  ;;  %vm238_vm4 = vcmask 1044480   ;;  %vm240_vm5 = vcmask 1045504   ;;  %vm242_vm6 = vcmask 1046528   ;;  %v251_v24 = vld [vmem:[%s3319_s13] sm:$0xff] }
  0x47   :  { %s2700_s26 = sld [smem:[#allocation2 + $0x4]]  ;;  %s2701_s28 = sld [smem:[#allocation2 + $0x5]]  ;;  %v2712_v28 = vld [vmem:[%s3324_s17] ss:$0 sm:$0xff]  ;;  %vm265_vm7 = vcmask 261120   ;;  %v310_v63 = vld [vmem:[%s3339_s29 + $0x8] sm:$0xff] }
  0x48   :  { %s2702_s1 = sld [smem:[#allocation2 + $0x6]]  ;;  %s2703_s2 = sld [smem:[#allocation2 + $0x7]]  ;;  %v309_v62 = vld [vmem:[%s3339_s29] sm:$0xff]  ;;  %vm3293_vm8 = vmmov 0   ;;  %vm404_vm9 = vcmask 130048   ;;  %vm556_vm10 = vcmask 64512  }
  0x49   :  { %s3462_s7 = sld [smem:[#allocation2 + $0x80]]  ;;  %s3464_s10 = sld [smem:[#allocation2 + $0x81]]  ;;  %vm1334_vm11 = vcmask 523264   ;;  %vm2631_vm12 = vcmask 1041409   ;;  %vm2634_vm13 = vcmask 254976  }
  0x4a   :  { %s3466_s11 = sld [smem:[#allocation2 + $0x82]]  ;;  %s3295_s17 = smov 64  }
  0x4b   :  { %s141_s15 = scalar_lea.vmem %s3314_s9, %s140_s22  ;;  %s144_s16 = scalar_lea.vmem %s3314_s9, %s2697_s0 }
  0x4c   :  { %v142_v0 = vld [vmem:[%s141_s15] sm:$0x1]  ;;  %s147_s18 = scalar_lea.vmem %s3314_s9, %s2698_s23  ;;  %s150_s6 = scalar_lea.vmem %s3314_s9, %s2699_s5 }
  0x4d   :  { %v145_v1 = vld [vmem:[%s144_s16] sm:$0x1]  ;;  %s153_s4 = scalar_lea.vmem %s3314_s9, %s2700_s26  ;;  %s156_s27 = scalar_lea.vmem %s3314_s9, %s2701_s28 }
  0x4e   :  { %v148_v2 = vld [vmem:[%s147_s18] sm:$0x1]  ;;  %v189_v4 = vrot.slane %v145_v1, 7  ;;  %s159_s22 = scalar_lea.vmem %s3314_s9, %s2702_s1  ;;  %s162_s0 = scalar_lea.vmem %s3314_s9, %s2703_s2  ;;  %v3043_v1 = vpack.c.bf16 %v310_v63, %v309_v62 }
  0x4f   :  { %v151_v3 = vld [vmem:[%s150_s6] sm:$0x1]  ;;  %v192_v7 = vrot.slane %v148_v2, 6  ;;  %s165_s6 = scalar_lea.vmem %s3314_s9, %s3462_s7  ;;  %s2707_s23 = sld [smem:[#allocation2 + $0x83]]  ;;  %v312_v2 = vld [vmem:[%s3339_s29 + $0x18] sm:$0xff] }
  0x50   :  { %v154_v5 = vld [vmem:[%s153_s4] sm:$0x1]  ;;  %v195_v8 = vrot.slane %v151_v3, 5  ;;  %v231_v13 = vsel %vm230_vm0, %v142_v0, %v189_v4  ;;  %s171_s4 = scalar_lea.vmem %s3314_s9, %s3466_s11  ;;  %s2708_s5 = sld [smem:[#allocation2 + $0x84]]  ;;  %v311_v0 = vld [vmem:[%s3339_s29 + $0x10] sm:$0xff]  ;;  %3044 = vmatprep.subr.bf16.mxu1 %v3043_v1 }
  0x51   :  { %v157_v6 = vld [vmem:[%s156_s27] sm:$0x1]  ;;  %v198_v11 = vrot.slane %v154_v5, 4  ;;  %v233_v16 = vsel %vm232_vm1, %v231_v13, %v192_v7  ;;  %s168_s27 = scalar_lea.vmem %s3314_s9, %s3464_s10  ;;  %s2709_s26 = sld [smem:[#allocation2 + $0x85]]  ;;  %v3047_v3 = vpack.c.bf16 %v312_v2, %v311_v0  ;;  %3046 = vmatpush3.bf16.msra.mxu1 %v3043_v1 }
  0x52   :  { %v160_v9 = vld [vmem:[%s159_s22] sm:$0x1]  ;;  %v201_v12 = vrot.slane %v157_v6, 3  ;;  %v235_v18 = vsel %vm234_vm2, %v233_v16, %v195_v8  ;;  %s2710_s28 = sld [smem:[#allocation2 + $0x86]]  ;;  %s2711_s1 = sld [smem:[#allocation2 + $0x87]] }
  0x53   :  { %v163_v10 = vld [vmem:[%s162_s0] sm:$0x1]  ;;  %v204_v14 = vrot.slane %v160_v9, 2  ;;  %v237_v21 = vsel %vm236_vm3, %v235_v18, %v198_v11  ;;  %3048 = vmatprep.subr.bf16.mxu1 %v3047_v3  ;;  %s3298_s29 = smov 48   ;;  %s3798_s15 = sld [smem:[#allocation14_spill]] }
  0x54   :  { %v207_v15 = vrot.slane %v163_v10, 1  ;;  %v166_v17 = vld [vmem:[%s165_s6] sm:$0x1]  ;;  %v239_v23 = vsel %vm238_vm4, %v237_v21, %v201_v12  ;;  %s3799_s16 = sld [smem:[#allocation15_spill]]  ;;  %s3800_s18 = sld [smem:[#allocation18_spill]] }
  0x55   :  { %v169_v19 = vld [vmem:[%s168_s27] sm:$0x1]  ;;  %v241_v25 = vsel %vm240_vm5, %v239_v23, %v204_v14  ;;  %s174_s2 = scalar_lea.vmem %s3314_s9, %s2707_s23  ;;  %3050 = vmatpush3.bf16.msra.mxu1 %v3047_v3  ;;  %s3801_s22 = sld [smem:[#allocation16_spill]] }
  0x56   :  { %v172_v20 = vld [vmem:[%s171_s4] sm:$0x1]  ;;  %v210_v22 = vrot.slane %v169_v19, 7  ;;  %v243_v27 = vsel %vm242_vm6, %v241_v25, %v207_v15  ;;  %s177_s7 = scalar_lea.vmem %s3314_s9, %s2708_s5  ;;  %s3802_s0 = sld [smem:[#allocation17_spill]] }
  0x57   :  { %v213_v26 = vrot.slane %v172_v20, 6  ;;  %v252_v30 = vadd.f32 %v251_v24, %v243_v27  ;;  %v175_v32 = vld [vmem:[%s174_s2] sm:$0x1]  ;;  %s180_s10 = scalar_lea.vmem %s3314_s9, %s2709_s26  ;;  %v3292_v20 = vmov 0.0   ;;  %s3803_s6 = sld [smem:[#allocation20_spill]] }
  0x58   :  { %v244_v29 = vsel %vm230_vm0, %v166_v17, %v210_v22  ;;  %v178_v34 = vld [vmem:[%s177_s7] sm:$0x1]  ;;  %s183_s13 = scalar_lea.vmem %s3314_s9, %s2710_s28  ;;  %s186_s11 = scalar_lea.vmem %s3314_s9, %s2711_s1  ;;  %v216_v36 = vrot.slane %v175_v32, 5  ;;  %2870 = vmatprep.subr.mxu1 %v3292_v20  ;;  %2880 = vmatprep.subr.mxu0 %v3292_v20 }
  0x59   :  { %v261_v31 = vadd.f32 %v2712_v28, %v252_v30  ;;  %v245_v33 = vsel %vm232_vm1, %v244_v29, %v213_v26  ;;  %v181_v35 = vld [vmem:[%s180_s10] sm:$0x1]  ;;  %v219_v40 = vrot.slane %v178_v34, 4  ;;  %2882 = vmatprep.mubr.msk.f32.mxu0 %vm3293_vm8, %v3292_v20  ;;  %s3294_s9 = smov 96   ;;  %s3804_s27 = sld [smem:[#allocation19_spill]] }
  0x5a   :  { %v184_v38 = vld [vmem:[%s183_s13] sm:$0x1]  ;;  %v222_v41 = vrot.slane %v181_v35, 3  ;;  %v246_v44 = vsel %vm234_vm2, %v245_v33, %v216_v36  ;;  %s3805_s4 = sld [smem:[#allocation21_spill]]  ;;  %s3300_s23 = smov [#allocation5]  }
  0x5b   :  { %v266_v37 = vsel %vm265_vm7, %v261_v31, 0.0  ;;  %v187_v39 = vld [vmem:[%s186_s11] sm:$0x1]  ;;  %v225_v42 = vrot.slane %v184_v38, 2  ;;  %v247_v45 = vsel %vm236_vm3, %v246_v44, %v219_v40  ;;  %s2642_s5 = sshll.u32 %s3300_s23, 4  ;;  %s2643_s5 = int_to_ptr.vmem [resolvable:$true] %s2642_s5 }
  0x5c   :  { %267 = vadd.xlane.f32.xlu0 %v266_v37  ;;  %v228_v43 = vrot.slane %v187_v39, 1  ;;  %v248_v46 = vsel %vm238_vm4, %v247_v45, %v222_v41  ;;  %v2713_v11 = vld [vmem:[%s3329_s21] ss:$0 sm:$0xff]  ;;  %s3296_s21 = smov 80   ;;  %s3235_s26 = scalar_lea.vmem %s2643_s5, 32 }
  0x5d   :  { %v249_v47 = vsel %vm240_vm5, %v248_v46, %v225_v42  ;;  %v2714_v13 = vld [vmem:[%s3334_s25] ss:$0 sm:$0xff]  ;;  %s3297_s25 = smov 112   ;;  %p3236_p5 = scmp.ne.s32.totalorder %s2643_s5, %s3235_s26 }
  0x5e   :  { %v250_v48 = vsel %vm242_vm6, %v249_v47, %v228_v43  ;;  %v2715_v21 = vld [vmem:[%s3344_s3] ss:$0 sm:$0xff]  ;;  %s3299_s3 = smov 16   ;;  %p3240_p6 = scmp.lt.s32.totalorder %s2643_s5, %s2643_s5 }
  0x5f   :  { %v253_v49 = vadd.f32 %v251_v24, %v250_v48  ;;  %p3241_p7 = scmp.lt.s32.totalorder %s3235_s26, %s3235_s26 }
  0x61   :  { %v262_v50 = vadd.f32 %v2712_v28, %v253_v49  ;;  %p3242_p8 = por %p3241_p7, %p3240_p6 }
  0x63   :  { %v269_v51 = vsel %vm265_vm7, %v262_v50, 0.0  ;;  %p3243_p9 = pnand %p3242_p8, %p3236_p5 }
  0x64   :  { %270 = vadd.xlane.f32.xlu0 %v269_v51 }
  0xe9   :  { %v268_v52 = vpop.xlane.xlu0 %267 }
  0xea   :  { %v273_v53 = vmul.f32 0.03125, %v268_v52 }
  0xec   :  { %v275_v54 = vsub.f32 %v261_v31, %v273_v53 }
  0xee   :  { %v277_v55 = vmul.f32 %v275_v54, %v275_v54 }
  0xf0   :  { %v279_v56 = vsel %vm265_vm7, %v277_v55, 0.0 }
  0xf1   :  { %280 = vadd.xlane.f32.xlu1 %v279_v56  ;;  %v271_v57 = vpop.xlane.xlu0 %270 }
  0xf2   :  { %v274_v58 = vmul.f32 0.03125, %v271_v57 }
  0xf4   :  { %v276_v59 = vsub.f32 %v262_v50, %v274_v58 }
  0xf6   :  { %v278_v60 = vmul.f32 %v276_v59, %v276_v59 }
  0xf8   :  { %v282_v61 = vsel %vm265_vm7, %v278_v60, 0.0 }
  0xf9   :  { %283 = vadd.xlane.f32.xlu1 %v282_v61 }
 0x17e   :  { %v281_v4 = vpop.xlane.xlu1 %280 }
 0x17f   :  { %v285_v5 = vmul.f32 0.03125, %v281_v4 }
 0x181   :  { %v287_v6 = vadd.f32 1e-12, %v285_v5 }
 0x183   :  { %3163 = vrsqrt.f32 %v287_v6 }
 0x186   :  { %v284_v7 = vpop.xlane.xlu1 %283 }
 0x187   :  { %v286_v8 = vmul.f32 0.03125, %v284_v7 }
 0x189   :  { %v288_v9 = vadd.f32 1e-12, %v286_v8 }
 0x18b   :  { %3165 = vrsqrt.f32 %v288_v9 }
 0x18d   :  { %v3164_v10 = vpop.eup %3163 }
 0x18e   :  { %v291_v12 = vmul.f32 %v3164_v10, %v275_v54 }
 0x190   :  { %v299_v14 = vmul.f32 %v2713_v11, %v291_v12 }
 0x192   :  { %v3513_v15 = vadd.f32 %v2714_v13, %v299_v14 }
 0x194   :  { %2867 = vmatprep.mubr.msk.f32.mxu1 %vm265_vm7, %v3513_v15 }
 0x195   :  { %v3166_v16 = vpop.eup %3165 }
 0x196   :  { %v292_v17 = vmul.f32 %v3166_v16, %v276_v59 }
 0x198   :  { %v300_v18 = vmul.f32 %v2713_v11, %v292_v17 }
 0x19a   :  { %v3517_v19 = vadd.f32 %v2714_v13, %v300_v18 }
 0x19c   :  { %2868 = vmatmul.mubr.msk.f32.vlgmr.msra.gmra.mrb[0].mxu1 %vm265_vm7, %v3517_v19 }
 0x19d   :  { %2872 = vmatprep.mubr.msk.f32.mxu1 %vm3293_vm8, %v3292_v20 }
 0x26f   :  { %v2869_v22 = vpop.f32.mrb[0].mxu1 }
 0x270   :  { %v3528_v23 = vadd.f32 %v2869_v22, %v2715_v21  ;;  %v392_v24 = vpop.f32.mrb[1].mxu1 }
 0x271   :  { %v3530_v25 = vadd.f32 %v2715_v21, %v392_v24  ;;  %v1072_v24 = vld [vmem:[%s3349_s8 + $0x8] sm:$0xff] }
 0x272   :  { %480 = vrot.lane.b32.xlu1 %v3528_v23, %s3294_s9 }
 0x273   :  { %402 = vrot.lane.b32.xlu0 %v3530_v25, %s3294_s9 }
 0x2e4   :  { %v481_v27 = vpop.permute.xlu1 %480 }
 0x2e5   :  { %v403_v26 = vpop.permute.xlu0 %402 }
 0x2e6   :  { %2871 = vmatpush3.xpose.msk.msra.mxu1 %vm404_vm9, %v403_v26 }
 0x2e7   :  { %2875 = vmatprep.subr.mxu1 %v3292_v20 }
 0x2e9   :  { %2873 = vmatmul.mubr.msk.f32.vlgmr.msra.gmra.mrb[2].mxu1 %vm404_vm9, %v3530_v25 }
 0x2ea   :  { %2876 = vmatpush3.xpose.msk.msra.mxu1 %vm404_vm9, %v481_v27  ;;  %2877 = vmatprep.mubr.msk.f32.mxu1 %vm3293_vm8, %v3292_v20  ;;  %v1074_v27 = vld [vmem:[%s3349_s8 + $0x18] sm:$0xff] }
 0x2eb   :  { %2885 = vmatprep.subr.mxu1 %v3292_v20 }
 0x2ed   :  { %2878 = vmatmul.mubr.msk.f32.vlgmr.msra.gmra.mrb[4].mxu1 %vm404_vm9, %v3528_v23 }
 0x2ee   :  { %2887 = vmatprep.mubr.msk.f32.mxu1 %vm3293_vm8, %v3292_v20 }
 0x3bc   :  { %v475_v28 = vpop.f32.mrb[2].mxu1 }
 0x3bd   :  { %v2874_v29 = vpop.f32.mrb[3].mxu1  ;;  %v557_v30 = vsel %vm556_vm10, %v475_v28, -inf }
 0x3be   :  { %558 = vmax.xlane.f32.xlu1 %v557_v30 }
 0x3c0   :  { %v552_v31 = vpop.f32.mrb[4].mxu1 }
 0x3c1   :  { %v2879_v32 = vpop.f32.mrb[5].mxu1  ;;  %v560_v33 = vsel %vm556_vm10, %v552_v31, -inf }
 0x3c2   :  { %561 = vmax.xlane.f32.xlu0 %v560_v33 }
 0x3cf   :  { %655 = vrot.lane.b32.xlu1 %v3528_v23, %s3295_s17 }
 0x3d3   :  { %733 = vrot.lane.b32.xlu1 %v3530_v25, %s3296_s21 }
 0x3d7   :  { %811 = vrot.lane.b32.xlu1 %v3528_v23, %s3296_s21 }
 0x3d8   :  { %579 = vrot.lane.b32.xlu0 %v3530_v25, %s3295_s17 }
 0x44b   :  { %v559_v34 = vpop.xlane.xlu1 %558 }
 0x44c   :  { %v563_v35 = vsub.f32 %v475_v28, %v559_v34 }
 0x44e   :  { %v565_v36 = vmul.f32 1.442695, %v563_v35 }
 0x44f   :  { %v656_v37 = vpop.permute.xlu1 %655  ;;  %v562_v38 = vpop.xlane.xlu0 %561 }
 0x450   :  { %3167 = vpow2.f32 %v565_v36  ;;  %v564_v39 = vsub.f32 %v552_v31, %v562_v38  ;;  %2886 = vmatpush3.msra.mxu1 %v656_v37  ;;  %v2730_v37 = vld [vmem:[%s3354_s14] ss:$0 sm:$0xff]  ;;  %s3793_s14 = sld [smem:[#allocation9_spill]] }
 0x451   :  { %2895 = vmatprep.subr.mxu1 %v3292_v20 }
 0x452   :  { %v567_v40 = vmul.f32 1.442695, %v564_v39 }
 0x453   :  { %v580_v41 = vpop.permute.xlu0 %579  ;;  %v734_v46 = vpop.permute.xlu1 %733 }
 0x454   :  { %3169 = vpow2.f32 %v567_v40  ;;  %2881 = vmatpush3.msra.mxu0 %v580_v41 }
 0x455   :  { %2890 = vmatprep.subr.mxu0 %v3292_v20 }
 0x457   :  { %v812_v47 = vpop.permute.xlu1 %811 }
 0x45a   :  { %v3168_v42 = vpop.eup %3167 }
 0x45b   :  { %v569_v43 = vsel %vm556_vm10, %v3168_v42, 0.0 }
 0x45c   :  { %570 = vadd.xlane.f32.xlu0 %v569_v43 }
 0x45e   :  { %v3170_v44 = vpop.eup %3169 }
 0x45f   :  { %v572_v45 = vsel %vm556_vm10, %v3170_v44, 0.0 }
 0x460   :  { %573 = vadd.xlane.f32.xlu1 %v572_v45 }
 0x471   :  { %809 = vrot.lane.b32.xlu1 %v3528_v23, %s3297_s25 }
 0x472   :  { %731 = vrot.lane.b32.xlu0 %v3530_v25, %s3297_s25 }
 0x4e9   :  { %v571_v48 = vpop.xlane.xlu0 %570 }
 0x4ea   :  { %3171 = vrcp.f32 %v571_v48 }
 0x4ed   :  { %v574_v49 = vpop.xlane.xlu1 %573  ;;  %v732_v54 = vpop.permute.xlu0 %731 }
 0x4ee   :  { %3173 = vrcp.f32 %v574_v49 }
 0x4f1   :  { %v810_v55 = vpop.permute.xlu1 %809 }
 0x4f4   :  { %v3172_v50 = vpop.eup %3171 }
 0x4f5   :  { %v577_v51 = vmul.f32 %v3172_v50, %v3168_v42 }
 0x4f7   :  { %2883 = vmatmul.mubr.msk.f32.vlgmr.msra.gmra.mrb[0].mxu0 %vm556_vm10, %v577_v51 }
 0x4f8   :  { %v3174_v52 = vpop.eup %3173  ;;  %2891 = vmatpush3.xpose.msk.msra.mxu0 %vm404_vm9, %v734_v46  ;;  %2892 = vmatprep.mubr.msk.f32.mxu0 %vm3293_vm8, %v3292_v20 }
 0x4f9   :  { %v578_v53 = vmul.f32 %v3174_v52, %v3170_v44  ;;  %2900 = vmatprep.subr.mxu0 %v3292_v20 }
 0x4fb   :  { %2888 = vmatmul.mubr.msk.f32.vlgmr.msra.gmra.mrb[6].mxu1 %vm556_vm10, %v578_v53  ;;  %2893 = vmatmul.mubr.msk.f32.vlgmr.msra.gmra.mrb[2].mxu0 %vm404_vm9, %v732_v54  ;;  %v1209_v54 = vld [vmem:[%s3369_s30] sm:$0xff] }
 0x4fc   :  { %2896 = vmatpush3.xpose.msk.msra.mxu1 %vm404_vm9, %v812_v47  ;;  %2897 = vmatprep.mubr.msk.f32.mxu1 %vm3293_vm8, %v3292_v20 }
 0x4fd   :  { %2905 = vmatprep.subr.mxu1 %v3292_v20  ;;  %2902 = vmatprep.mubr.msk.f32.mxu0 %vm3293_vm8, %v3292_v20 }
 0x4ff   :  { %2898 = vmatmul.mubr.msk.f32.vlgmr.msra.gmra.mrb[8].mxu1 %vm404_vm9, %v810_v55  ;;  %v1210_v55 = vld [vmem:[%s3369_s30 + $0x8] sm:$0xff] }
 0x500   :  { %2907 = vmatprep.mubr.msk.f32.mxu1 %vm3293_vm8, %v3292_v20 }
 0x5ca   :  { %v651_v56 = vpop.f32.mrb[0].mxu0 }
 0x5cb   :  { %v2884_v57 = vpop.f32.mrb[1].mxu0 }
 0x5cc   :  { %v1211_v57 = vld [vmem:[%s3369_s30 + $0x10] sm:$0xff] }
 0x5ce   :  { %v3582_v58 = vpop.f32.mrb[6].mxu1  ;;  %v805_v59 = vpop.f32.mrb[2].mxu0 }
 0x5cf   :  { %v2889_v60 = vpop.f32.mrb[7].mxu1  ;;  %v2894_v61 = vpop.f32.mrb[3].mxu0  ;;  %v887_v62 = vsel %vm556_vm10, %v805_v59, -inf }
 0x5d0   :  { %888 = vmax.xlane.f32.xlu0 %v887_v62 }
 0x5d2   :  { %v883_v63 = vpop.f32.mrb[8].mxu1 }
 0x5d3   :  { %v2899_v0 = vpop.f32.mrb[9].mxu1  ;;  %v890_v1 = vsel %vm556_vm10, %v883_v63, -inf }
 0x5d4   :  { %891 = vmax.xlane.f32.xlu1 %v890_v1 }
 0x5e5   :  { %985 = vrot.lane.b32.xlu1 %v3528_v23, %s3298_s29  ;;  %v1071_v23 = vld [vmem:[%s3349_s8] sm:$0xff] }
 0x5e6   :  { %v3051_v26 = vpack.c.bf16 %v1072_v24, %v1071_v23  ;;  %v1325_v24 = vld [vmem:[%s3379_s12 + $0x30] sm:$0xff] }
 0x65d   :  { %v889_v2 = vpop.xlane.xlu0 %888 }
 0x65e   :  { %v893_v3 = vsub.f32 %v805_v59, %v889_v2 }
 0x660   :  { %v895_v4 = vmul.f32 1.442695, %v893_v3  ;;  %v2733_v3 = vld [vmem:[%s3359_s19] ss:$0 sm:$0xff]  ;;  %s3794_s19 = sld [smem:[#allocation12_spill]] }
 0x661   :  { %v892_v5 = vpop.xlane.xlu1 %891 }
 0x662   :  { %3175 = vpow2.f32 %v895_v4  ;;  %v894_v6 = vsub.f32 %v883_v63, %v892_v5  ;;  %v2734_v5 = vld [vmem:[%s3364_s24] ss:$0 sm:$0xff]  ;;  %s3795_s24 = sld [smem:[#allocation10_spill]] }
 0x664   :  { %v897_v7 = vmul.f32 1.442695, %v894_v6 }
 0x665   :  { %v986_v8 = vpop.permute.xlu1 %985 }
 0x666   :  { %3177 = vpow2.f32 %v897_v7  ;;  %2906 = vmatpush3.msra.mxu1 %v986_v8 }
 0x66c   :  { %v3176_v9 = vpop.eup %3175 }
 0x66d   :  { %v899_v10 = vsel %vm556_vm10, %v3176_v9, 0.0 }
 0x66e   :  { %900 = vadd.xlane.f32.xlu0 %v899_v10 }
 0x670   :  { %v3178_v11 = vpop.eup %3177 }
 0x671   :  { %v902_v12 = vsel %vm556_vm10, %v3178_v11, 0.0 }
 0x672   :  { %903 = vadd.xlane.f32.xlu0 %v902_v12  ;;  %v1319_v12 = vld [vmem:[%s3379_s12] sm:$0xff] }
 0x688   :  { %909 = vrot.lane.b32.xlu0 %v3530_v25, %s3298_s29  ;;  %v1073_v25 = vld [vmem:[%s3349_s8 + $0x10] sm:$0xff]  ;;  %s3792_s8 = sld [smem:[#allocation8_spill]] }
 0x689   :  { %v3055_v28 = vpack.c.bf16 %v1074_v27, %v1073_v25 }
 0x68e   :  { %v2735_v27 = vld [vmem:[%s3792_s8] ss:$0 sm:$0xff] }
 0x6fb   :  { %v901_v13 = vpop.xlane.xlu0 %900 }
 0x6fc   :  { %3179 = vrcp.f32 %v901_v13  ;;  %v1320_v13 = vld [vmem:[%s3379_s12 + $0x8] sm:$0xff] }
 0x6ff   :  { %v904_v14 = vpop.xlane.xlu0 %903 }
 0x700   :  { %3181 = vrcp.f32 %v904_v14  ;;  %v3067_v14 = vpack.c.bf16 %v1320_v13, %v1319_v12 }
 0x703   :  { %v910_v16 = vpop.permute.xlu0 %909 }
 0x704   :  { %2901 = vmatpush3.msra.mxu0 %v910_v16  ;;  %v1321_v16 = vld [vmem:[%s3379_s12 + $0x10] sm:$0xff] }
 0x705   :  { %3052 = vmatprep.subr.bf16.mxu0 %v3051_v26 }
 0x706   :  { %v3180_v17 = vpop.eup %3179 }
 0x707   :  { %v907_v18 = vmul.f32 %v3180_v17, %v3176_v9  ;;  %v1322_v17 = vld [vmem:[%s3379_s12 + $0x18] sm:$0xff] }
 0x709   :  { %2903 = vmatmul.mubr.msk.f32.vlgmr.msra.gmra.mrb[4].mxu0 %vm556_vm10, %v907_v18  ;;  %v3071_v18 = vpack.c.bf16 %v1322_v17, %v1321_v16  ;;  %v2741_v17 = vld [vmem:[%s3795_s24] ss:$0 sm:$0xff] }
 0x70a   :  { %v3182_v21 = vpop.eup %3181  ;;  %3054 = vmatpush3.bf16.msra.mxu0 %v3051_v26  ;;  %v1326_v26 = vld [vmem:[%s3379_s12 + $0x38] sm:$0xff] }
 0x70b   :  { %v908_v22 = vmul.f32 %v3182_v21, %v3178_v11  ;;  %3056 = vmatprep.subr.bf16.mxu0 %v3055_v28  ;;  %v1323_v21 = vld [vmem:[%s3379_s12 + $0x20] sm:$0xff]  ;;  %v3079_v25 = vpack.c.bf16 %v1326_v26, %v1325_v24 }
 0x70d   :  { %2908 = vmatmul.mubr.msk.f32.vlgmr.msra.gmra.mrb[10].mxu1 %vm556_vm10, %v908_v22  ;;  %v1324_v22 = vld [vmem:[%s3379_s12 + $0x28] sm:$0xff]  ;;  %s3797_s12 = sld [smem:[#allocation13_spill]] }
 0x70e   :  { %3058 = vmatpush3.bf16.msra.mxu0 %v3055_v28  ;;  %v3075_v23 = vpack.c.bf16 %v1324_v22, %v1323_v21 }
 0x70f   :  { %3068 = vmatprep.subr.bf16.mxu0 %v3067_v14 }
 0x7dc   :  { %v981_v29 = vpop.f32.mrb[4].mxu0 }
 0x7dd   :  { %1063 = vrot.lane.b32.xlu1 %v981_v29, %s3299_s3  ;;  %v2904_v30 = vpop.f32.mrb[5].mxu0 }
 0x7e0   :  { %v1057_v31 = vpop.f32.mrb[10].mxu1 }
 0x7e1   :  { %1065 = vrot.lane.b32.xlu1 %v1057_v31, %s3299_s3  ;;  %v2909_v32 = vpop.f32.mrb[11].mxu1 }
 0x84f   :  { %v1064_v33 = vpop.permute.xlu1 %1063 }
 0x850   :  { %v1069_v34 = vsel %vm404_vm9, %v651_v56, %v1064_v33  ;;  %v3059_v56 = vpack.c.bf16 %v1210_v55, %v1209_v54 }
 0x851   :  { %2918 = vmatprep.mubr.msk.f32.mxu0 %vm265_vm7, %v1069_v34 }
 0x852   :  { %3060 = vmatprep.subr.bf16.mxu1 %v3059_v56 }
 0x853   :  { %v1066_v35 = vpop.permute.xlu1 %1065  ;;  %3062 = vmatpush3.bf16.msra.mxu1 %v3059_v56 }
 0x854   :  { %v1070_v36 = vsel %vm404_vm9, %v3582_v58, %v1066_v35  ;;  %v1212_v58 = vld [vmem:[%s3369_s30 + $0x18] sm:$0xff]  ;;  %s3796_s30 = sld [smem:[#allocation11_spill]] }
 0x855   :  { %2919 = vmatmul.mubr.msk.f32.vlgmr.msra.gmra.mrb[6].mxu0 %vm265_vm7, %v1070_v36  ;;  %v3063_v59 = vpack.c.bf16 %v1212_v58, %v1211_v57 }
 0x856   :  { %3070 = vmatpush3.bf16.msra.mxu0 %v3067_v14 }
 0x857   :  { %3064 = vmatprep.subr.bf16.mxu1 %v3063_v59  ;;  %3072 = vmatprep.subr.bf16.mxu0 %v3071_v18 }
 0x858   :  { %3066 = vmatpush3.bf16.msra.mxu1 %v3063_v59 }
 0x85a   :  { %3074 = vmatpush3.bf16.msra.mxu0 %v3071_v18 }
 0x85b   :  { %3076 = vmatprep.subr.bf16.mxu0 %v3075_v23 }
 0x85e   :  { %3078 = vmatpush3.bf16.msra.mxu0 %v3075_v23  ;;  %v2742_v23 = vld [vmem:[%s3796_s30] ss:$0 sm:$0xff] }
 0x85f   :  { %3080 = vmatprep.subr.bf16.mxu0 %v3079_v25 }
 0x862   :  { %3082 = vmatpush3.bf16.msra.mxu0 %v3079_v25 }
 0x863   :  { %2972 = vmatprep.subr.mxu0 %v3292_v20 }
 0x928   :  { %v2920_v38 = vpop.f32.mrb[6].mxu0 }
 0x929   :  { %v1160_v39 = vadd.f32 %v2920_v38, %v2730_v37  ;;  %v1154_v40 = vpop.f32.mrb[7].mxu0 }
 0x92a   :  { %v1155_v41 = vadd.f32 %v2730_v37, %v1154_v40 }
 0x92b   :  { %v1164_v42 = vadd.f32 %v1160_v39, %v3517_v19 }
 0x92c   :  { %v1163_v43 = vadd.f32 %v1155_v41, %v3513_v15 }
 0x92d   :  { %v1170_v44 = vsel %vm265_vm7, %v1164_v42, 0.0 }
 0x92e   :  { %1171 = vadd.xlane.f32.xlu1 %v1170_v44  ;;  %v1167_v45 = vsel %vm265_vm7, %v1163_v43, 0.0 }
 0x92f   :  { %1168 = vadd.xlane.f32.xlu0 %v1167_v45 }
 0x9bb   :  { %v1172_v46 = vpop.xlane.xlu1 %1171 }
 0x9bc   :  { %v1174_v47 = vmul.f32 0.03125, %v1172_v46  ;;  %v1169_v48 = vpop.xlane.xlu0 %1168 }
 0x9bd   :  { %v1173_v49 = vmul.f32 0.03125, %v1169_v48 }
 0x9be   :  { %v1176_v50 = vsub.f32 %v1164_v42, %v1174_v47 }
 0x9bf   :  { %v1175_v51 = vsub.f32 %v1163_v43, %v1173_v49 }
 0x9c0   :  { %v1178_v15 = vmul.f32 %v1176_v50, %v1176_v50 }
 0x9c1   :  { %v1177_v52 = vmul.f32 %v1175_v51, %v1175_v51 }
 0x9c2   :  { %v1182_v53 = vsel %vm265_vm7, %v1178_v15, 0.0 }
 0x9c3   :  { %v1179_v19 = vsel %vm265_vm7, %v1177_v52, 0.0 }
 0x9c4   :  { %1180 = vadd.xlane.f32.xlu0 %v1179_v19 }
 0x9c8   :  { %1183 = vadd.xlane.f32.xlu0 %v1182_v53 }
 0xa51   :  { %v1181_v60 = vpop.xlane.xlu0 %1180 }
 0xa52   :  { %v1185_v61 = vmul.f32 0.03125, %v1181_v60 }
 0xa54   :  { %v1187_v62 = vadd.f32 1e-12, %v1185_v61 }
 0xa55   :  { %v1184_v63 = vpop.xlane.xlu0 %1183 }
 0xa56   :  { %3183 = vrsqrt.f32 %v1187_v62  ;;  %v1186_v0 = vmul.f32 0.03125, %v1184_v63 }
 0xa58   :  { %v1188_v1 = vadd.f32 1e-12, %v1186_v0 }
 0xa5a   :  { %3185 = vrsqrt.f32 %v1188_v1 }
 0xa60   :  { %v3184_v2 = vpop.eup %3183 }
 0xa61   :  { %v1191_v4 = vmul.f32 %v3184_v2, %v1175_v51 }
 0xa63   :  { %v1199_v6 = vmul.f32 %v2733_v3, %v1191_v4  ;;  %v1463_v4 = vld [vmem:[%s3794_s19 + $0x8] sm:$0xff] }
 0xa64   :  { %v3186_v7 = vpop.eup %3185 }
 0xa65   :  { %v1192_v8 = vmul.f32 %v3186_v7, %v1176_v50  ;;  %v1207_v9 = vadd.f32 %v2734_v5, %v1199_v6  ;;  %v2738_v50 = vld [vmem:[%s3793_s14] ss:$0 sm:$0xff]  ;;  %v1464_v6 = vld [vmem:[%s3794_s19 + $0x10] sm:$0xff]  ;;  %v1465_v7 = vld [vmem:[%s3794_s19 + $0x18] sm:$0xff] }
 0xa67   :  { %v1200_v10 = vmul.f32 %v2733_v3, %v1192_v8  ;;  %2929 = vmatprep.mubr.msk.f32.mxu1 %vm265_vm7, %v1207_v9  ;;  %v1462_v3 = vld [vmem:[%s3794_s19] sm:$0xff]  ;;  %v3087_v8 = vpack.c.bf16 %v1465_v7, %v1464_v6 }
 0xa69   :  { %v1208_v11 = vadd.f32 %v2734_v5, %v1200_v10  ;;  %v3083_v5 = vpack.c.bf16 %v1463_v4, %v1462_v3 }
 0xa6b   :  { %2930 = vmatmul.mubr.msk.f32.vlgmr.msra.gmra.mrb[12].mxu1 %vm265_vm7, %v1208_v11  ;;  %3084 = vmatprep.subr.bf16.mxu1 %v3083_v5 }
 0xa6c   :  { %3086 = vmatpush3.bf16.msra.mxu1 %v3083_v5 }
 0xa6d   :  { %3088 = vmatprep.subr.bf16.mxu1 %v3087_v8 }
 0xa70   :  { %3090 = vmatpush3.bf16.msra.mxu1 %v3087_v8 }
 0xa71   :  { %2962 = vmatprep.subr.mxu1 %v3292_v20 }
 0xb3e   :  { %v2931_v28 = vpop.f32.mrb[12].mxu1 }
 0xb3f   :  { %v1298_v29 = vadd.f32 %v2931_v28, %v2735_v27  ;;  %v1292_v30 = vpop.f32.mrb[13].mxu1  ;;  %v2743_v28 = vld [vmem:[%s3797_s12] ss:$0 sm:$0xff] }
 0xb40   :  { %v1293_v31 = vadd.f32 %v2735_v27, %v1292_v30 }
 0xb41   :  { %v1304_v32 = vmul.f32 0.044715, %v1298_v29  ;;  %v1302_v47 = vmul.f32 0.5, %v1298_v29 }
 0xb42   :  { %v1303_v33 = vmul.f32 0.044715, %v1293_v31  ;;  %v1301_v45 = vmul.f32 0.5, %v1293_v31 }
 0xb43   :  { %v1306_v34 = vmul.f32 %v1304_v32, %v1298_v29 }
 0xb44   :  { %v1305_v35 = vmul.f32 %v1303_v33, %v1293_v31 }
 0xb45   :  { %v1308_v36 = vmul.f32 %v1306_v34, %v1298_v29 }
 0xb46   :  { %v1307_v37 = vmul.f32 %v1305_v35, %v1293_v31 }
 0xb47   :  { %v1310_v38 = vadd.f32 %v1308_v36, %v1298_v29 }
 0xb48   :  { %v1309_v39 = vadd.f32 %v1307_v37, %v1293_v31 }
 0xb49   :  { %v1312_v40 = vmul.f32 0.7978846, %v1310_v38 }
 0xb4a   :  { %v1311_v41 = vmul.f32 0.7978846, %v1309_v39 }
 0xb4b   :  { %3187 = vtanh.f32 %v1312_v40 }
 0xb4c   :  { %3189 = vtanh.f32 %v1311_v41 }
 0xb55   :  { %v3188_v42 = vpop.eup %3187 }
 0xb56   :  { %v3190_v43 = vpop.eup %3189  ;;  %v1316_v44 = vadd.f32 1.0, %v3188_v42 }
 0xb57   :  { %v1315_v46 = vadd.f32 1.0, %v3190_v43 }
 0xb58   :  { %v1318_v49 = vmul.f32 %v1316_v44, %v1302_v47 }
 0xb59   :  { %v1317_v48 = vmul.f32 %v1315_v46, %v1301_v45 }
 0xb5b   :  { %2948 = vmatprep.mubr.msk.f32.mxu0 %vm1334_vm11, %v1317_v48 }
 0xb5c   :  { %2949 = vmatmul.mubr.msk.f32.vlgmr.msra.gmra.mrb[8].mxu0 %vm1334_vm11, %v1318_v49 }
 0xb5d   :  { %2974 = vmatprep.mubr.msk.f32.mxu0 %vm3293_vm8, %v3292_v20 }
 0xc2f   :  { %v2950_v51 = vpop.f32.mrb[8].mxu0 }
 0xc30   :  { %v1413_v52 = vadd.f32 %v2950_v51, %v2738_v50  ;;  %v1407_v19 = vpop.f32.mrb[9].mxu0 }
 0xc31   :  { %v1408_v15 = vadd.f32 %v2738_v50, %v1407_v19 }
 0xc32   :  { %v1417_v53 = vadd.f32 %v1413_v52, %v1208_v11 }
 0xc33   :  { %v1416_v54 = vadd.f32 %v1408_v15, %v1207_v9 }
 0xc34   :  { %v1423_v55 = vsel %vm265_vm7, %v1417_v53, 0.0 }
 0xc35   :  { %1424 = vadd.xlane.f32.xlu1 %v1423_v55  ;;  %v1420_v56 = vsel %vm265_vm7, %v1416_v54, 0.0 }
 0xc36   :  { %1421 = vadd.xlane.f32.xlu0 %v1420_v56 }
 0xcc2   :  { %v1425_v57 = vpop.xlane.xlu1 %1424 }
 0xcc3   :  { %v1427_v58 = vmul.f32 0.03125, %v1425_v57  ;;  %v1422_v59 = vpop.xlane.xlu0 %1421 }
 0xcc4   :  { %v1426_v60 = vmul.f32 0.03125, %v1422_v59 }
 0xcc5   :  { %v1429_v61 = vsub.f32 %v1417_v53, %v1427_v58 }
 0xcc6   :  { %v1428_v62 = vsub.f32 %v1416_v54, %v1426_v60 }
 0xcc7   :  { %v1431_v63 = vmul.f32 %v1429_v61, %v1429_v61 }
 0xcc8   :  { %v1430_v0 = vmul.f32 %v1428_v62, %v1428_v62 }
 0xcc9   :  { %v1435_v1 = vsel %vm265_vm7, %v1431_v63, 0.0 }
 0xcca   :  { %1436 = vadd.xlane.f32.xlu1 %v1435_v1  ;;  %v1432_v2 = vsel %vm265_vm7, %v1430_v0, 0.0 }
 0xccb   :  { %1433 = vadd.xlane.f32.xlu0 %v1432_v2 }
 0xd57   :  { %v1437_v9 = vpop.xlane.xlu1 %1436 }
 0xd58   :  { %v1439_v10 = vmul.f32 0.03125, %v1437_v9  ;;  %v1434_v11 = vpop.xlane.xlu0 %1433 }
 0xd59   :  { %v1438_v12 = vmul.f32 0.03125, %v1434_v11 }
 0xd5a   :  { %v1441_v13 = vadd.f32 1e-12, %v1439_v10 }
 0xd5b   :  { %v1440_v14 = vadd.f32 1e-12, %v1438_v12 }
 0xd5c   :  { %3191 = vrsqrt.f32 %v1441_v13 }
 0xd5d   :  { %3193 = vrsqrt.f32 %v1440_v14 }
 0xd66   :  { %v3192_v16 = vpop.eup %3191 }
 0xd67   :  { %v3194_v18 = vpop.eup %3193  ;;  %v1445_v21 = vmul.f32 %v3192_v16, %v1429_v61 }
 0xd68   :  { %v1444_v22 = vmul.f32 %v3194_v18, %v1428_v62 }
 0xd69   :  { %v1453_v24 = vmul.f32 %v2741_v17, %v1445_v21 }
 0xd6a   :  { %v1452_v26 = vmul.f32 %v2741_v17, %v1444_v22 }
 0xd6b   :  { %v3648_v27 = vadd.f32 %v2742_v23, %v1453_v24 }
 0xd6c   :  { %v3646_v25 = vadd.f32 %v2742_v23, %v1452_v26 }
 0xd6e   :  { %2959 = vmatprep.mubr.msk.f32.mxu1 %vm265_vm7, %v3646_v25 }
 0xd6f   :  { %2960 = vmatmul.mubr.msk.f32.vlgmr.msra.gmra.mrb[14].mxu1 %vm265_vm7, %v3648_v27 }
 0xd70   :  { %2964 = vmatprep.mubr.msk.f32.mxu1 %vm3293_vm8, %v3292_v20 }
 0xe42   :  { %v2961_v29 = vpop.f32.mrb[14].mxu1 }
 0xe43   :  { %v3657_v30 = vadd.f32 %v2961_v29, %v2743_v28  ;;  %v1545_v31 = vpop.f32.mrb[15].mxu1  ;;  %v2222_v29 = vld [vmem:[%s3798_s15] sm:$0xff] }
 0xe44   :  { %v3659_v32 = vadd.f32 %v2743_v28, %v1545_v31 }
 0xe45   :  { %1632 = vrot.lane.b32.xlu1 %v3657_v30, %s3294_s9 }
 0xe46   :  { %1555 = vrot.lane.b32.xlu0 %v3659_v32, %s3294_s9 }
 0xeb7   :  { %v1633_v34 = vpop.permute.xlu1 %1632 }
 0xeb8   :  { %v1556_v33 = vpop.permute.xlu0 %1555 }
 0xeb9   :  { %2963 = vmatpush3.xpose.msk.msra.mxu1 %vm404_vm9, %v1556_v33  ;;  %v2225_v33 = vld [vmem:[%s3798_s15 + $0x18] sm:$0xff] }
 0xeba   :  { %2967 = vmatprep.subr.mxu1 %v3292_v20 }
 0xebc   :  { %2965 = vmatmul.mubr.msk.f32.vlgmr.msra.gmra.mrb[16].mxu1 %vm404_vm9, %v3659_v32 }
 0xebd   :  { %2968 = vmatpush3.xpose.msk.msra.mxu1 %vm404_vm9, %v1633_v34  ;;  %2969 = vmatprep.mubr.msk.f32.mxu1 %vm3293_vm8, %v3292_v20 }
 0xebe   :  { %2977 = vmatprep.subr.mxu1 %v3292_v20 }
 0xec0   :  { %2970 = vmatmul.mubr.msk.f32.vlgmr.msra.gmra.mrb[18].mxu1 %vm404_vm9, %v3657_v30 }
 0xec1   :  { %2979 = vmatprep.mubr.msk.f32.mxu1 %vm3293_vm8, %v3292_v20 }
 0xf8f   :  { %v1627_v35 = vpop.f32.mrb[16].mxu1 }
 0xf90   :  { %v2966_v36 = vpop.f32.mrb[17].mxu1  ;;  %v1708_v37 = vsel %vm556_vm10, %v1627_v35, -inf }
 0xf91   :  { %1709 = vmax.xlane.f32.xlu1 %v1708_v37 }
 0xf93   :  { %v1704_v38 = vpop.f32.mrb[18].mxu1 }
 0xf94   :  { %v2971_v39 = vpop.f32.mrb[19].mxu1  ;;  %v1711_v40 = vsel %vm556_vm10, %v1704_v38, -inf }
 0xf95   :  { %1712 = vmax.xlane.f32.xlu0 %v1711_v40 }
 0xfa2   :  { %1806 = vrot.lane.b32.xlu1 %v3657_v30, %s3295_s17 }
 0xfa6   :  { %1884 = vrot.lane.b32.xlu1 %v3659_v32, %s3296_s21 }
 0xfaa   :  { %1962 = vrot.lane.b32.xlu1 %v3657_v30, %s3296_s21 }
 0xfab   :  { %1730 = vrot.lane.b32.xlu0 %v3659_v32, %s3295_s17 }
0x101e   :  { %v1710_v41 = vpop.xlane.xlu1 %1709 }
0x101f   :  { %v1714_v42 = vsub.f32 %v1627_v35, %v1710_v41 }
0x1021   :  { %v1716_v43 = vmul.f32 1.442695, %v1714_v42 }
0x1022   :  { %v1807_v44 = vpop.permute.xlu1 %1806  ;;  %v1713_v45 = vpop.xlane.xlu0 %1712 }
0x1023   :  { %3195 = vpow2.f32 %v1716_v43  ;;  %v1715_v46 = vsub.f32 %v1704_v38, %v1713_v45  ;;  %2978 = vmatpush3.msra.mxu1 %v1807_v44  ;;  %v2758_v43 = vld [vmem:[%s3799_s16] ss:$0 sm:$0xff] }
0x1024   :  { %2987 = vmatprep.subr.mxu1 %v3292_v20 }
0x1025   :  { %v1718_v47 = vmul.f32 1.442695, %v1715_v46 }
0x1026   :  { %v1731_v48 = vpop.permute.xlu0 %1730  ;;  %v1885_v19 = vpop.permute.xlu1 %1884 }
0x1027   :  { %3197 = vpow2.f32 %v1718_v47  ;;  %2973 = vmatpush3.msra.mxu0 %v1731_v48 }
0x1028   :  { %2982 = vmatprep.subr.mxu0 %v3292_v20 }
0x102a   :  { %v1963_v15 = vpop.permute.xlu1 %1962 }
0x102d   :  { %v3196_v49 = vpop.eup %3195 }
0x102e   :  { %v1720_v50 = vsel %vm556_vm10, %v3196_v49, 0.0 }
0x102f   :  { %1721 = vadd.xlane.f32.xlu0 %v1720_v50 }
0x1031   :  { %v3198_v51 = vpop.eup %3197 }
0x1032   :  { %v1723_v52 = vsel %vm556_vm10, %v3198_v51, 0.0 }
0x1033   :  { %1724 = vadd.xlane.f32.xlu1 %v1723_v52 }
0x1044   :  { %1960 = vrot.lane.b32.xlu1 %v3657_v30, %s3297_s25 }
0x1045   :  { %1882 = vrot.lane.b32.xlu0 %v3659_v32, %s3297_s25 }
0x10bc   :  { %v1722_v53 = vpop.xlane.xlu0 %1721 }
0x10bd   :  { %3199 = vrcp.f32 %v1722_v53 }
0x10c0   :  { %v1725_v54 = vpop.xlane.xlu1 %1724  ;;  %v1883_v59 = vpop.permute.xlu0 %1882 }
0x10c1   :  { %3201 = vrcp.f32 %v1725_v54 }
0x10c4   :  { %v1961_v60 = vpop.permute.xlu1 %1960 }
0x10c7   :  { %v3200_v55 = vpop.eup %3199 }
0x10c8   :  { %v1728_v56 = vmul.f32 %v3200_v55, %v3196_v49 }
0x10ca   :  { %2975 = vmatmul.mubr.msk.f32.vlgmr.msra.gmra.mrb[10].mxu0 %vm556_vm10, %v1728_v56 }
0x10cb   :  { %v3202_v57 = vpop.eup %3201  ;;  %2983 = vmatpush3.xpose.msk.msra.mxu0 %vm404_vm9, %v1885_v19  ;;  %2984 = vmatprep.mubr.msk.f32.mxu0 %vm3293_vm8, %v3292_v20 }
0x10cc   :  { %v1729_v58 = vmul.f32 %v3202_v57, %v3198_v51  ;;  %2992 = vmatprep.subr.mxu0 %v3292_v20 }
0x10ce   :  { %2980 = vmatmul.mubr.msk.f32.vlgmr.msra.gmra.mrb[20].mxu1 %vm556_vm10, %v1729_v58  ;;  %2985 = vmatmul.mubr.msk.f32.vlgmr.msra.gmra.mrb[12].mxu0 %vm404_vm9, %v1883_v59  ;;  %v2360_v58 = vld [vmem:[%s3800_s18] sm:$0xff]  ;;  %v2361_v59 = vld [vmem:[%s3800_s18 + $0x8] sm:$0xff] }
0x10cf   :  { %2988 = vmatpush3.xpose.msk.msra.mxu1 %vm404_vm9, %v1963_v15  ;;  %2989 = vmatprep.mubr.msk.f32.mxu1 %vm3293_vm8, %v3292_v20 }
0x10d0   :  { %2997 = vmatprep.subr.mxu1 %v3292_v20  ;;  %2994 = vmatprep.mubr.msk.f32.mxu0 %vm3293_vm8, %v3292_v20 }
0x10d2   :  { %2990 = vmatmul.mubr.msk.f32.vlgmr.msra.gmra.mrb[22].mxu1 %vm404_vm9, %v1961_v60  ;;  %v3099_v60 = vpack.c.bf16 %v2361_v59, %v2360_v58 }
0x10d3   :  { %2999 = vmatprep.mubr.msk.f32.mxu1 %vm3293_vm8, %v3292_v20 }
0x119d   :  { %v1802_v61 = vpop.f32.mrb[10].mxu0 }
0x119e   :  { %v2976_v62 = vpop.f32.mrb[11].mxu0 }
0x119f   :  { %v2363_v62 = vld [vmem:[%s3800_s18 + $0x18] sm:$0xff] }
0x11a1   :  { %v1878_v63 = vpop.f32.mrb[20].mxu1  ;;  %v1956_v0 = vpop.f32.mrb[12].mxu0 }
0x11a2   :  { %v2981_v1 = vpop.f32.mrb[21].mxu1  ;;  %v2986_v2 = vpop.f32.mrb[13].mxu0  ;;  %v2038_v3 = vsel %vm556_vm10, %v1956_v0, -inf }
0x11a3   :  { %2039 = vmax.xlane.f32.xlu0 %v2038_v3 }
0x11a5   :  { %v2034_v4 = vpop.f32.mrb[22].mxu1 }
0x11a6   :  { %v2991_v5 = vpop.f32.mrb[23].mxu1  ;;  %v2041_v6 = vsel %vm556_vm10, %v2034_v4, -inf }
0x11a7   :  { %2042 = vmax.xlane.f32.xlu1 %v2041_v6 }
0x11b8   :  { %2136 = vrot.lane.b32.xlu1 %v3657_v30, %s3298_s29  ;;  %v2223_v30 = vld [vmem:[%s3798_s15 + $0x8] sm:$0xff] }
0x11b9   :  { %v3091_v31 = vpack.c.bf16 %v2223_v30, %v2222_v29  ;;  %v2476_v29 = vld [vmem:[%s3803_s6 + $0x30] sm:$0xff]  ;;  %v2477_v30 = vld [vmem:[%s3803_s6 + $0x38] sm:$0xff] }
0x1230   :  { %v2040_v7 = vpop.xlane.xlu0 %2039 }
0x1231   :  { %v2044_v8 = vsub.f32 %v1956_v0, %v2040_v7  ;;  %v2761_v7 = vld [vmem:[%s3801_s22] ss:$0 sm:$0xff] }
0x1233   :  { %v2046_v20 = vmul.f32 1.442695, %v2044_v8 }
0x1234   :  { %v2043_v9 = vpop.xlane.xlu1 %2042 }
0x1235   :  { %3203 = vpow2.f32 %v2046_v20  ;;  %v2045_v10 = vsub.f32 %v2034_v4, %v2043_v9  ;;  %v2762_v20 = vld [vmem:[%s3802_s0] ss:$0 sm:$0xff] }
0x1237   :  { %v2048_v11 = vmul.f32 1.442695, %v2045_v10 }
0x1238   :  { %v2137_v12 = vpop.permute.xlu1 %2136 }
0x1239   :  { %3205 = vpow2.f32 %v2048_v11  ;;  %2998 = vmatpush3.msra.mxu1 %v2137_v12 }
0x123a   :  { %3100 = vmatprep.subr.bf16.mxu1 %v3099_v60 }
0x123f   :  { %v3204_v13 = vpop.eup %3203 }
0x1240   :  { %v2050_v14 = vsel %vm556_vm10, %v3204_v13, 0.0 }
0x1241   :  { %2051 = vadd.xlane.f32.xlu0 %v2050_v14 }
0x1243   :  { %v3206_v16 = vpop.eup %3205 }
0x1244   :  { %v2053_v17 = vsel %vm556_vm10, %v3206_v16, 0.0 }
0x1245   :  { %2054 = vadd.xlane.f32.xlu0 %v2053_v17  ;;  %v2471_v17 = vld [vmem:[%s3803_s6 + $0x8] sm:$0xff] }
0x125b   :  { %2060 = vrot.lane.b32.xlu0 %v3659_v32, %s3298_s29  ;;  %v2224_v32 = vld [vmem:[%s3798_s15 + $0x10] sm:$0xff] }
0x125c   :  { %v3095_v34 = vpack.c.bf16 %v2225_v33, %v2224_v32  ;;  %v2763_v32 = vld [vmem:[%s3804_s27] ss:$0 sm:$0xff] }
0x12ce   :  { %v2052_v18 = vpop.xlane.xlu0 %2051 }
0x12cf   :  { %3207 = vrcp.f32 %v2052_v18 }
0x12d2   :  { %v2055_v21 = vpop.xlane.xlu0 %2054 }
0x12d3   :  { %3209 = vrcp.f32 %v2055_v21  ;;  %v2472_v21 = vld [vmem:[%s3803_s6 + $0x10] sm:$0xff] }
0x12d6   :  { %v2061_v22 = vpop.permute.xlu0 %2060 }
0x12d7   :  { %2993 = vmatpush3.msra.mxu0 %v2061_v22  ;;  %v2473_v22 = vld [vmem:[%s3803_s6 + $0x18] sm:$0xff] }
0x12d8   :  { %3092 = vmatprep.subr.bf16.mxu0 %v3091_v31 }
0x12d9   :  { %v3208_v23 = vpop.eup %3207 }
0x12da   :  { %v2058_v24 = vmul.f32 %v3208_v23, %v3204_v13  ;;  %v3111_v23 = vpack.c.bf16 %v2473_v22, %v2472_v21 }
0x12dc   :  { %2995 = vmatmul.mubr.msk.f32.vlgmr.msra.gmra.mrb[14].mxu0 %vm556_vm10, %v2058_v24  ;;  %v2474_v24 = vld [vmem:[%s3803_s6 + $0x20] sm:$0xff] }
0x12dd   :  { %v3210_v26 = vpop.eup %3209  ;;  %3094 = vmatpush3.bf16.msra.mxu0 %v3091_v31  ;;  %v3119_v31 = vpack.c.bf16 %v2477_v30, %v2476_v29 }
0x12de   :  { %v2059_v28 = vmul.f32 %v3210_v26, %v3206_v16  ;;  %3096 = vmatprep.subr.bf16.mxu0 %v3095_v34  ;;  %v2470_v16 = vld [vmem:[%s3803_s6] sm:$0xff]  ;;  %v2475_v26 = vld [vmem:[%s3803_s6 + $0x28] sm:$0xff] }
0x12df   :  { %v3107_v18 = vpack.c.bf16 %v2471_v17, %v2470_v16 }
0x12e0   :  { %3000 = vmatmul.mubr.msk.f32.vlgmr.msra.gmra.mrb[24].mxu1 %vm556_vm10, %v2059_v28  ;;  %v3115_v28 = vpack.c.bf16 %v2475_v26, %v2474_v24 }
0x12e1   :  { %3098 = vmatpush3.bf16.msra.mxu0 %v3095_v34  ;;  %3102 = vmatpush3.bf16.msra.mxu1 %v3099_v60 }
0x12e2   :  { %3108 = vmatprep.subr.bf16.mxu0 %v3107_v18 }
0x13af   :  { %v2132_v35 = vpop.f32.mrb[14].mxu0 }
0x13b0   :  { %2214 = vrot.lane.b32.xlu1 %v2132_v35, %s3299_s3  ;;  %v2996_v36 = vpop.f32.mrb[15].mxu0 }
0x13b3   :  { %v2208_v37 = vpop.f32.mrb[24].mxu1 }
0x13b4   :  { %2216 = vrot.lane.b32.xlu1 %v2208_v37, %s3299_s3  ;;  %v3001_v38 = vpop.f32.mrb[25].mxu1 }
0x1422   :  { %v2215_v39 = vpop.permute.xlu1 %2214 }
0x1423   :  { %v2220_v40 = vsel %vm404_vm9, %v1802_v61, %v2215_v39  ;;  %v2362_v61 = vld [vmem:[%s3800_s18 + $0x10] sm:$0xff] }
0x1424   :  { %3010 = vmatprep.mubr.msk.f32.mxu0 %vm265_vm7, %v2220_v40 }
0x1426   :  { %v2217_v41 = vpop.permute.xlu1 %2216 }
0x1427   :  { %v2221_v42 = vsel %vm404_vm9, %v1878_v63, %v2217_v41  ;;  %v3103_v63 = vpack.c.bf16 %v2363_v62, %v2362_v61 }
0x1428   :  { %3011 = vmatmul.mubr.msk.f32.vlgmr.msra.gmra.mrb[16].mxu0 %vm265_vm7, %v2221_v42 }
0x1429   :  { %3104 = vmatprep.subr.bf16.mxu1 %v3103_v63  ;;  %3110 = vmatpush3.bf16.msra.mxu0 %v3107_v18 }
0x142a   :  { %3106 = vmatpush3.bf16.msra.mxu1 %v3103_v63  ;;  %3112 = vmatprep.subr.bf16.mxu0 %v3111_v23 }
0x142d   :  { %3114 = vmatpush3.bf16.msra.mxu0 %v3111_v23 }
0x142e   :  { %3116 = vmatprep.subr.bf16.mxu0 %v3115_v28 }
0x1431   :  { %3118 = vmatpush3.bf16.msra.mxu0 %v3115_v28 }
0x1432   :  { %3120 = vmatprep.subr.bf16.mxu0 %v3119_v31 }
0x1435   :  { %3122 = vmatpush3.bf16.msra.mxu0 %v3119_v31 }
0x14fb   :  { %v3012_v44 = vpop.f32.mrb[16].mxu0 }
0x14fc   :  { %v2311_v45 = vadd.f32 %v3012_v44, %v2758_v43  ;;  %v2305_v46 = vpop.f32.mrb[17].mxu0 }
0x14fd   :  { %v2306_v47 = vadd.f32 %v2758_v43, %v2305_v46 }
0x14fe   :  { %v2315_v48 = vadd.f32 %v2311_v45, %v3648_v27 }
0x14ff   :  { %v2314_v49 = vadd.f32 %v2306_v47, %v3646_v25 }
0x1500   :  { %v2321_v50 = vsel %vm265_vm7, %v2315_v48, 0.0 }
0x1501   :  { %2322 = vadd.xlane.f32.xlu1 %v2321_v50  ;;  %v2318_v51 = vsel %vm265_vm7, %v2314_v49, 0.0 }
0x1502   :  { %2319 = vadd.xlane.f32.xlu0 %v2318_v51 }
0x158e   :  { %v2323_v52 = vpop.xlane.xlu1 %2322 }
0x158f   :  { %v2325_v19 = vmul.f32 0.03125, %v2323_v52  ;;  %v2320_v15 = vpop.xlane.xlu0 %2319 }
0x1590   :  { %v2324_v53 = vmul.f32 0.03125, %v2320_v15 }
0x1591   :  { %v2327_v54 = vsub.f32 %v2315_v48, %v2325_v19 }
0x1592   :  { %v2326_v55 = vsub.f32 %v2314_v49, %v2324_v53  ;;  %v2766_v53 = vld [vmem:[%s3444_s20] ss:$0 sm:$0xff]  ;;  %s3806_s20 = sld [smem:[#allocation22_spill]] }
0x1593   :  { %v2329_v25 = vmul.f32 %v2327_v54, %v2327_v54 }
0x1594   :  { %v2328_v56 = vmul.f32 %v2326_v55, %v2326_v55 }
0x1595   :  { %v2333_v57 = vsel %vm265_vm7, %v2329_v25, 0.0 }
0x1596   :  { %v2330_v27 = vsel %vm265_vm7, %v2328_v56, 0.0 }
0x1597   :  { %2331 = vadd.xlane.f32.xlu0 %v2330_v27 }
0x1598   :  { %v2770_v17 = vld [vmem:[%s3806_s20] ss:$0 sm:$0xff] }
0x159b   :  { %2334 = vadd.xlane.f32.xlu0 %v2333_v57 }
0x1624   :  { %v2332_v0 = vpop.xlane.xlu0 %2331 }
0x1625   :  { %v2336_v1 = vmul.f32 0.03125, %v2332_v0 }
0x1627   :  { %v2338_v2 = vadd.f32 1e-12, %v2336_v1 }
0x1628   :  { %v2335_v3 = vpop.xlane.xlu0 %2334 }
0x1629   :  { %3211 = vrsqrt.f32 %v2338_v2  ;;  %v2337_v4 = vmul.f32 0.03125, %v2335_v3 }
0x162b   :  { %v2339_v5 = vadd.f32 1e-12, %v2337_v4 }
0x162d   :  { %3213 = vrsqrt.f32 %v2339_v5 }
0x1633   :  { %v3212_v6 = vpop.eup %3211 }
0x1634   :  { %v2342_v8 = vmul.f32 %v3212_v6, %v2326_v55 }
0x1636   :  { %v2350_v9 = vmul.f32 %v2761_v7, %v2342_v8 }
0x1637   :  { %v3214_v10 = vpop.eup %3213 }
0x1638   :  { %v2343_v11 = vmul.f32 %v3214_v10, %v2327_v54  ;;  %v2358_v12 = vadd.f32 %v2762_v20, %v2350_v9 }
0x163a   :  { %v2351_v13 = vmul.f32 %v2761_v7, %v2343_v11  ;;  %3021 = vmatprep.mubr.msk.f32.mxu1 %vm265_vm7, %v2358_v12 }
0x163c   :  { %v2359_v14 = vadd.f32 %v2762_v20, %v2351_v13 }
0x163e   :  { %3022 = vmatmul.mubr.msk.f32.vlgmr.msra.gmra.mrb[26].mxu1 %vm265_vm7, %v2359_v14 }
0x1711   :  { %v3023_v33 = vpop.f32.mrb[26].mxu1 }
0x1712   :  { %v2449_v34 = vadd.f32 %v3023_v33, %v2763_v32  ;;  %v2443_v35 = vpop.f32.mrb[27].mxu1 }
0x1713   :  { %v2444_v36 = vadd.f32 %v2763_v32, %v2443_v35 }
0x1714   :  { %v2455_v37 = vmul.f32 0.044715, %v2449_v34  ;;  %v2453_v52 = vmul.f32 0.5, %v2449_v34 }
0x1715   :  { %v2454_v38 = vmul.f32 0.044715, %v2444_v36  ;;  %v2452_v50 = vmul.f32 0.5, %v2444_v36 }
0x1716   :  { %v2457_v39 = vmul.f32 %v2455_v37, %v2449_v34 }
0x1717   :  { %v2456_v40 = vmul.f32 %v2454_v38, %v2444_v36 }
0x1718   :  { %v2459_v41 = vmul.f32 %v2457_v39, %v2449_v34 }
0x1719   :  { %v2458_v42 = vmul.f32 %v2456_v40, %v2444_v36 }
0x171a   :  { %v2461_v43 = vadd.f32 %v2459_v41, %v2449_v34 }
0x171b   :  { %v2460_v44 = vadd.f32 %v2458_v42, %v2444_v36 }
0x171c   :  { %v2463_v45 = vmul.f32 0.7978846, %v2461_v43 }
0x171d   :  { %v2462_v46 = vmul.f32 0.7978846, %v2460_v44 }
0x171e   :  { %3215 = vtanh.f32 %v2463_v45 }
0x171f   :  { %3217 = vtanh.f32 %v2462_v46 }
0x1728   :  { %v3216_v47 = vpop.eup %3215 }
0x1729   :  { %v3218_v48 = vpop.eup %3217  ;;  %v2467_v49 = vadd.f32 1.0, %v3216_v47 }
0x172a   :  { %v2466_v51 = vadd.f32 1.0, %v3218_v48 }
0x172b   :  { %v2469_v15 = vmul.f32 %v2467_v49, %v2453_v52 }
0x172c   :  { %v2468_v19 = vmul.f32 %v2466_v51, %v2452_v50 }
0x172e   :  { %3040 = vmatprep.mubr.msk.f32.mxu0 %vm1334_vm11, %v2468_v19 }
0x172f   :  { %3041 = vmatmul.mubr.msk.f32.vlgmr.msra.gmra.mrb[18].mxu0 %vm1334_vm11, %v2469_v15 }
0x1802   :  { %v3042_v54 = vpop.f32.mrb[18].mxu0 }
0x1803   :  { %v2563_v55 = vadd.f32 %v3042_v54, %v2766_v53  ;;  %v2557_v56 = vpop.f32.mrb[19].mxu0 }
0x1804   :  { %v2558_v27 = vadd.f32 %v2766_v53, %v2557_v56 }
0x1805   :  { %v2567_v25 = vadd.f32 %v2563_v55, %v2359_v14 }
0x1806   :  { %v2566_v57 = vadd.f32 %v2558_v27, %v2358_v12  ;;  %v2769_v12 = vld [vmem:[%s3805_s4] ss:$0 sm:$0xff] }
0x1807   :  { %v2573_v58 = vsel %vm265_vm7, %v2567_v25, 0.0 }
0x1808   :  { %2574 = vadd.xlane.f32.xlu1 %v2573_v58  ;;  %v2570_v59 = vsel %vm265_vm7, %v2566_v57, 0.0 }
0x1809   :  { %2571 = vadd.xlane.f32.xlu0 %v2570_v59 }
0x1895   :  { %v2575_v60 = vpop.xlane.xlu1 %2574 }
0x1896   :  { %v2577_v61 = vmul.f32 0.03125, %v2575_v60  ;;  %v2572_v62 = vpop.xlane.xlu0 %2571 }
0x1897   :  { %v2576_v63 = vmul.f32 0.03125, %v2572_v62 }
0x1898   :  { %v2579_v0 = vsub.f32 %v2567_v25, %v2577_v61 }
0x1899   :  { %v2578_v1 = vsub.f32 %v2566_v57, %v2576_v63 }
0x189a   :  { %v2581_v2 = vmul.f32 %v2579_v0, %v2579_v0 }
0x189b   :  { %v2580_v3 = vmul.f32 %v2578_v1, %v2578_v1 }
0x189c   :  { %v2585_v4 = vsel %vm265_vm7, %v2581_v2, 0.0 }
0x189d   :  { %2586 = vadd.xlane.f32.xlu1 %v2585_v4  ;;  %v2582_v5 = vsel %vm265_vm7, %v2580_v3, 0.0 }
0x189e   :  { %2583 = vadd.xlane.f32.xlu0 %v2582_v5 }
0x192a   :  { %v2587_v6 = vpop.xlane.xlu1 %2586 }
0x192b   :  { %v2589_v7 = vmul.f32 0.03125, %v2587_v6  ;;  %v2584_v8 = vpop.xlane.xlu0 %2583 }
0x192c   :  { %v2588_v20 = vmul.f32 0.03125, %v2584_v8 }
0x192d   :  { %v2591_v9 = vadd.f32 1e-12, %v2589_v7 }
0x192e   :  { %v2590_v10 = vadd.f32 1e-12, %v2588_v20 }
0x192f   :  { %3219 = vrsqrt.f32 %v2591_v9 }
0x1930   :  { %3221 = vrsqrt.f32 %v2590_v10 }
0x1939   :  { %v3220_v11 = vpop.eup %3219 }
0x193a   :  { %v3222_v13 = vpop.eup %3221  ;;  %v2595_v14 = vmul.f32 %v3220_v11, %v2579_v0 }
0x193b   :  { %v2594_v16 = vmul.f32 %v3222_v13, %v2578_v1 }
0x193c   :  { %v2603_v18 = vmul.f32 %v2769_v12, %v2595_v14 }
0x193d   :  { %v2602_v21 = vmul.f32 %v2769_v12, %v2594_v16 }
0x193e   :  { %v2611_v22 = vadd.f32 %v2770_v17, %v2603_v18 }
0x193f   :  { %v2610_v23 = vadd.f32 %v2770_v17, %v2602_v21 }
0x1940   :  { %v2619_v24 = vsel %vm265_vm7, %v2611_v22, 0.0 }
0x1941   :  { %v2612_v26 = vsel %vm265_vm7, %v2610_v23, 0.0  ;;  %v2620_v28 = vrot.slane %v2619_v24, 4 }
0x1942   :  { %v2613_v29 = vrot.slane %v2612_v26, 4 }
0x1943   :  { %v2621_v30 = vadd.f32 %v2620_v28, %v2619_v24 }
0x1944   :  { %v2614_v31 = vadd.f32 %v2613_v29, %v2612_v26 }
0x1945   :  { %v2622_v32 = vrot.slane %v2621_v30, 2 }
0x1946   :  { %v2615_v33 = vrot.slane %v2614_v31, 2 }
0x1947   :  { %v2623_v34 = vadd.f32 %v2622_v32, %v2621_v30 }
0x1948   :  { %v2616_v35 = vadd.f32 %v2615_v33, %v2614_v31 }
0x1949   :  { %v2624_v36 = vrot.slane %v2623_v34, 1 }
0x194a   :  { %v2617_v37 = vrot.slane %v2616_v35, 1 }
0x194b   :  { %v2625_v38 = vadd.f32 %v2624_v36, %v2623_v34 }
0x194c   :  { %v2618_v39 = vadd.f32 %v2617_v37, %v2616_v35 }
0x194d   :  { %v2628_v40 = vmul.f32 0.125, %v2625_v38 }
0x194e   :  { %v2627_v41 = vmul.f32 0.125, %v2618_v39 }
0x1950   :  { %v2632_v42 = vsel %vm2631_vm12, %v2628_v40, %v2627_v41 }
0x1951   :  { %2635 = vst.msk [vmem:[#allocation5] sm:$0x3] %vm2634_vm13, %v2632_v42 }
0x1952   :  { %3246 = shalt.err (!%p3243_p9)
}
0x1953   :  { %s3807_s28 = sld [smem:[#allocation23_spill]] }
0x1959   :  { %s3247_s1 = scalar_lea.hbm %s3807_s28, 32 }
0x195a   :  { %p3248_p10 = scmp.ne.s32.totalorder %s3807_s28, %s3247_s1  ;;  %p3251_p11 = scmp.lt.u32.totalorder %s3247_s1, %s3807_s28 }
0x195c   :  { %p3253_p12 = pnand %p3251_p11, %p3248_p10 }
0x195e   :  { %3256 = shalt.err (!%p3253_p12)
}
0x195f   :  { %2645 = dma.vmem_to_hbm [thread:$0]  %s2643_s5, 32, %s3807_s28, [#allocation3]  }
0x1960   :  { %3259 = dma.done.wait [#allocation3], 32  }
0x1961   :  { %3260 = vsyncadd [#allocation3], 4294967264 }
0x1962   :  { %2649 = vsyncpa [#allocation3], 1 }
0x1963   :  { %2650 = vsyncpa [#allocation4], 1 }

</bundles_post_ra>
